<compile_context>
chip_gen: v7x
topology: tpu7x:2x2x1
jax: 0.10.0
libtpu: 0.0.40
codegen_flags: <defaults>
</compile_context>

<pallas_src>
import numpy as np
import jax
import jax.numpy as jnp
from jax.experimental import pallas as pl
from jax.experimental.pallas import tpu as pltpu


# ----------------------------- Pallas kernel ------------------------------ #

def _conv_1xk(s_ref, a, w_ref, b_ref):
    """'same' 1xK conv along W (+ folded-BN bias) as K shifted matmuls.

    a:     (W_in, C_in)  channels-last activation (value, in vregs).
    s_ref: (W_in + 2*pad, C_in) VMEM scratch used as the zero-padded buffer.
    w_ref: (K, C_in, C_out) BN-folded conv weights.
    b_ref: (1, C_out)       BN-folded bias.
    """
    w_in = a.shape[0]
    k = w_ref.shape[0]
    pad = (s_ref.shape[0] - w_in) // 2
    w_out = w_in + 2 * pad - k + 1
    s_ref[...] = jnp.zeros_like(s_ref)          # pad rows stay zero
    s_ref[pl.ds(pad, w_in), :] = a
    acc = jnp.dot(s_ref[pl.ds(0, w_out), :], w_ref[0],
                  preferred_element_type=jnp.float32) + b_ref[...]
    for j in range(1, k):
        acc = acc + jnp.dot(s_ref[pl.ds(j, w_out), :], w_ref[j],
                            preferred_element_type=jnp.float32)
    return acc


def _fused_forward_kernel(x1_ref, w1_ref, b1_ref, w2_ref, b2_ref,
                          w3_ref, b3_ref, w4_ref, b4_ref, w5_ref, b5_ref,
                          p1_ref, p2_ref, p3_ref, gfc_ref, bfc_ref,
                          o_ref, s2_ref, s3_ref, s4_ref, s5_ref):
    mm = lambda x, y: jnp.dot(x, y, preferred_element_type=jnp.float32)

    # conv1 (3x5) + bn1 + relu: host im2col -> plain matmul.        (18, 32)
    a = jnp.maximum(mm(x1_ref[0], w1_ref[...]) + b1_ref[...], 0.0)

    # conv2 (1x5, pad 2) + bn2, avg-pool(1,2,pad 1), relu.          (10, 64)
    a = _conv_1xk(s2_ref, a, w2_ref, b2_ref)
    a = jnp.maximum(mm(p1_ref[...], a), 0.0)

    # conv3 (1x3, pad 1) + bn3, avg-pool(1,2,pad 1), relu.          (6, 128)
    a = _conv_1xk(s3_ref, a, w3_ref, b3_ref)
    a = jnp.maximum(mm(p2_ref[...], a), 0.0)

    # conv4 (1x3, pad 1) + bn4 + relu.                              (6, 256)
    a = jnp.maximum(_conv_1xk(s4_ref, a, w4_ref, b4_ref), 0.0)

    # conv5 (1x3, pad 1) + bn5, avg-pool(1,2,pad 0), relu.          (3, 256)
    a = _conv_1xk(s5_ref, a, w5_ref, b5_ref)
    a = jnp.maximum(mm(p3_ref[...], a), 0.0)

    # fc1 on the channels-last activation: y = sum_w a[w,:] @ G[w] + b.
    y = bfc_ref[...]
    for w in range(gfc_ref.shape[0]):
        y = y + mm(a[w:w + 1, :], gfc_ref[w])
    o_ref[0] = y.astype(o_ref.dtype)


# ------------------------------- wrapper ----------------------------------- #

def _full_spec(arr):
    """Whole-array block (block dims equal the array dims), same block every step."""
    if arr.ndim == 2:
        return pl.BlockSpec(arr.shape, lambda i: (0, 0))
    return pl.BlockSpec(arr.shape, lambda i: (0, 0, 0))


def forward(x, kp):
    """x: (N, 1, 3, 18) NCHW input; kp: kernel-ready (BN-folded) parameters."""
    n, cin, h, w = x.shape
    assert (cin, h, w) == (1, 3, 18), "fc1(384*2) fixes the input to (N,1,3,18)"

    # im2col for conv1 only (feature order (kh, kw) matches PyTorch flatten).
    xp = jnp.pad(x, ((0, 0), (0, 0), (0, 0), (2, 2)))
    cols = [xp[:, 0, kh, kw:kw + w] for kh in range(3) for kw in range(5)]
    x1 = jnp.stack(cols, axis=-1)                     # (N, 18, 15)

    wc = w                      # conv1/conv2 output width (18)
    wp1 = wc // 2 + 1           # after first pool  (10)
    wp2 = wp1 // 2 + 1          # after second pool (6)

    args = (x1, kp["w1"], kp["b1"], kp["w2"], kp["b2"], kp["w3"], kp["b3"],
            kp["w4"], kp["b4"], kp["w5"], kp["b5"],
            kp["p1"], kp["p2"], kp["p3"], kp["gfc"], kp["bfc"])

    in_specs = [pl.BlockSpec((1,) + x1.shape[1:], lambda i: (i, 0, 0))]
    in_specs += [_full_spec(a) for a in args[1:]]

    grid_spec = pltpu.PrefetchScalarGridSpec(
        num_scalar_prefetch=0,
        grid=(n,),
        in_specs=in_specs,
        out_specs=pl.BlockSpec((1, 1, 4), lambda i: (i, 0, 0)),
        scratch_shapes=[
            pltpu.VMEM((wc + 4, 32), jnp.float32),    # conv2 zero-padded input
            pltpu.VMEM((wp1 + 2, 64), jnp.float32),   # conv3 zero-padded input
            pltpu.VMEM((wp2 + 2, 128), jnp.float32),  # conv4 zero-padded input
            pltpu.VMEM((wp2 + 2, 256), jnp.float32),  # conv5 zero-padded input
        ],
    )

    out = pl.pallas_call(
        _fused_forward_kernel,
        out_shape=jax.ShapeDtypeStruct((n, 1, 4), jnp.float32),
        grid_spec=grid_spec,
        compiler_params=pltpu.CompilerParams(
            dimension_semantics=("parallel",)),
    )(*args)
    return out.reshape(n, 4)


# ---------------------------- parameter setup ------------------------------ #

def init_conv(key, cout, cin, kh, kw):
    k = jax.random.split(key, 6)
    return {
        "w": 0.1 * jax.random.normal(k[0], (cout, cin, kh, kw), jnp.float32),
        "b": 0.1 * jax.random.normal(k[1], (cout,), jnp.float32),
        "g": 1.0 + 0.1 * jax.random.normal(k[2], (cout,), jnp.float32),
        "be": 0.1 * jax.random.normal(k[3], (cout,), jnp.float32),
        "m": 0.1 * jax.random.normal(k[4], (cout,), jnp.float32),
        "v": 1.0 + 0.1 * jax.random.uniform(k[5], (cout,), jnp.float32),
    }


def make_params(key):
    k = jax.random.split(key, 7)
    return {
        "c1": init_conv(k[0], 32, 1, 3, 5),
        "c2": init_conv(k[1], 64, 32, 1, 5),
        "c3": init_conv(k[2], 128, 64, 1, 3),
        "c4": init_conv(k[3], 256, 128, 1, 3),
        "c5": init_conv(k[4], 256, 256, 1, 3),
        "fc_w": 0.05 * jax.random.normal(k[5], (4, 384 * 2), jnp.float32),
        "fc_b": 0.05 * jax.random.normal(k[6], (4,), jnp.float32),
    }


def _fold_bn(prm):
    scale = prm["g"] * jax.lax.rsqrt(prm["v"] + 1e-5)
    shift = prm["be"] + (prm["b"] - prm["m"]) * scale
    return scale, shift


def _pool_matrix(w_in, pad):
    """avg_pool2d(kernel=(1,2), stride=(1,2), padding=(0,pad)) as a matrix."""
    w_out = (w_in + 2 * pad - 2) // 2 + 1
    p = np.zeros((w_out, w_in), np.float32)
    for v in range(w_out):
        for t in range(2):
            src = 2 * v + t - pad
            if 0 <= src < w_in:
                p[v, src] = 0.5            # count_include_pad=True -> always /2
    return jnp.asarray(p)


def prepare_kernel_params(params):
    """One-time host prep: fold BN into conv weights, reorder for the kernel."""
    kp = {}
    s, sh = _fold_bn(params["c1"])
    kp["w1"] = params["c1"]["w"].reshape(32, 15).T * s[None, :]     # (15, 32)
    kp["b1"] = sh.reshape(1, -1)
    for i, name in ((2, "c2"), (3, "c3"), (4, "c4"), (5, "c5")):
        s, sh = _fold_bn(params[name])
        wi = params[name]["w"][:, :, 0, :]                          # (Cout,Cin,K)
        kp[f"w{i}"] = jnp.transpose(wi, (2, 1, 0)) * s[None, None, :]
        kp[f"b{i}"] = sh.reshape(1, -1)
    # fc1: PyTorch flatten order is (C, H=1, W) -> regroup weights as (W, C, 4).
    kp["gfc"] = jnp.transpose(params["fc_w"].reshape(4, 256, 3), (2, 1, 0))
    kp["bfc"] = params["fc_b"].reshape(1, -1)
    kp["p1"] = _pool_matrix(18, 1)     # 18 -> 10
    kp["p2"] = _pool_matrix(10, 1)     # 10 -> 6
    kp["p3"] = _pool_matrix(6, 0)      # 6  -> 3
    return kp


if __name__ == "__main__":
    root = jax.random.PRNGKey(0)
    pkey, xkey = jax.random.split(root)
    params = make_params(pkey)
    kp = prepare_kernel_params(params)

    # (2,1,3,18) -> conv1 (2,32,1,18) -> ... -> (2,256,1,3) -> 768 -> fc -> (2,4)
    x = jax.random.normal(xkey, (2, 1, 3, 18), jnp.float32)

    fwd = jax.jit(forward)
    out = jax.block_until_ready(fwd(x, kp))
    assert out.shape == (2, 4), out.shape
    print("KERNEL_OK")
</pallas_src>

<mosaic_0001>
module attributes {stable_mosaic.version = 11 : i64} {
  func.func @_fused_forward_kernel(%arg0: i32, %arg1: memref<1x18x15xf32, #tpu.memory_space<vmem>>, %arg2: memref<15x32xf32, #tpu.memory_space<vmem>>, %arg3: memref<1x32xf32, #tpu.memory_space<vmem>>, %arg4: memref<5x32x64xf32, #tpu.memory_space<vmem>>, %arg5: memref<1x64xf32, #tpu.memory_space<vmem>>, %arg6: memref<3x64x128xf32, #tpu.memory_space<vmem>>, %arg7: memref<1x128xf32, #tpu.memory_space<vmem>>, %arg8: memref<3x128x256xf32, #tpu.memory_space<vmem>>, %arg9: memref<1x256xf32, #tpu.memory_space<vmem>>, %arg10: memref<3x256x256xf32, #tpu.memory_space<vmem>>, %arg11: memref<1x256xf32, #tpu.memory_space<vmem>>, %arg12: memref<10x18xf32, #tpu.memory_space<vmem>>, %arg13: memref<6x10xf32, #tpu.memory_space<vmem>>, %arg14: memref<3x6xf32, #tpu.memory_space<vmem>>, %arg15: memref<3x256x4xf32, #tpu.memory_space<vmem>>, %arg16: memref<1x4xf32, #tpu.memory_space<vmem>>, %arg17: memref<1x1x4xf32, #tpu.memory_space<vmem>>, %arg18: memref<22x32xf32, #tpu.memory_space<vmem>>, %arg19: memref<12x64xf32, #tpu.memory_space<vmem>>, %arg20: memref<8x128xf32, #tpu.memory_space<vmem>>, %arg21: memref<8x256xf32, #tpu.memory_space<vmem>>) attributes {dimension_semantics = [#tpu.dimension_semantics<parallel>], iteration_bounds = array<i64: 2>, scalar_prefetch = 0 : i64, scratch_operands = 4 : i64, tpu.core_type = #tpu.core_type<tc>, window_params = [{transform_indices = @transform_0, window_bounds = array<i64: 1, 18, 15>}, {pipeline_mode = #tpu.pipeline_mode<synchronous>, transform_indices = @transform_1, window_bounds = array<i64: 15, 32>}, {pipeline_mode = #tpu.pipeline_mode<synchronous>, transform_indices = @transform_2, window_bounds = array<i64: 1, 32>}, {pipeline_mode = #tpu.pipeline_mode<synchronous>, transform_indices = @transform_3, window_bounds = array<i64: 5, 32, 64>}, {pipeline_mode = #tpu.pipeline_mode<synchronous>, transform_indices = @transform_4, window_bounds = array<i64: 1, 64>}, {pipeline_mode = #tpu.pipeline_mode<synchronous>, transform_indices = @transform_5, window_bounds = array<i64: 3, 64, 128>}, {pipeline_mode = #tpu.pipeline_mode<synchronous>, transform_indices = @transform_6, window_bounds = array<i64: 1, 128>}, {pipeline_mode = #tpu.pipeline_mode<synchronous>, transform_indices = @transform_7, window_bounds = array<i64: 3, 128, 256>}, {pipeline_mode = #tpu.pipeline_mode<synchronous>, transform_indices = @transform_8, window_bounds = array<i64: 1, 256>}, {pipeline_mode = #tpu.pipeline_mode<synchronous>, transform_indices = @transform_9, window_bounds = array<i64: 3, 256, 256>}, {pipeline_mode = #tpu.pipeline_mode<synchronous>, transform_indices = @transform_10, window_bounds = array<i64: 1, 256>}, {pipeline_mode = #tpu.pipeline_mode<synchronous>, transform_indices = @transform_11, window_bounds = array<i64: 10, 18>}, {pipeline_mode = #tpu.pipeline_mode<synchronous>, transform_indices = @transform_12, window_bounds = array<i64: 6, 10>}, {pipeline_mode = #tpu.pipeline_mode<synchronous>, transform_indices = @transform_13, window_bounds = array<i64: 3, 6>}, {pipeline_mode = #tpu.pipeline_mode<synchronous>, transform_indices = @transform_14, window_bounds = array<i64: 3, 256, 4>}, {pipeline_mode = #tpu.pipeline_mode<synchronous>, transform_indices = @transform_15, window_bounds = array<i64: 1, 4>}, {transform_indices = @transform_16, window_bounds = array<i64: 1, 1, 4>}]} {
    %c0 = arith.constant 0 : index
    %c0_0 = arith.constant 0 : index
    %c0_1 = arith.constant 0 : index
    %0 = vector.load %arg1[%c0, %c0_0, %c0_1] : memref<1x18x15xf32, #tpu.memory_space<vmem>>, vector<1x18x15xf32>
    %1 = vector.shape_cast %0 : vector<1x18x15xf32> to vector<18x15xf32>
    %c0_2 = arith.constant 0 : index
    %c0_3 = arith.constant 0 : index
    %2 = vector.load %arg2[%c0_2, %c0_3] : memref<15x32xf32, #tpu.memory_space<vmem>>, vector<15x32xf32>
    %cst = arith.constant dense<0.000000e+00> : vector<18x32xf32>
    %3 = tpu.matmul %1, %2, %cst {dimension_numbers = #tpu.dot_dimension_numbers<[1], [0], [0], [1], [0, 0, 1, 1], [], []>} : vector<18x15xf32>, vector<15x32xf32>, vector<18x32xf32> -> vector<18x32xf32>
    %c0_4 = arith.constant 0 : index
    %c0_5 = arith.constant 0 : index
    %4 = vector.load %arg3[%c0_4, %c0_5] : memref<1x32xf32, #tpu.memory_space<vmem>>, vector<1x32xf32>
    %5 = vector.broadcast %4 : vector<1x32xf32> to vector<18x32xf32>
    %6 = arith.addf %3, %5 : vector<18x32xf32>
    %cst_6 = arith.constant 0.000000e+00 : f32
    %7 = vector.broadcast %cst_6 : f32 to vector<18x32xf32>
    %8 = arith.maximumf %6, %7 : vector<18x32xf32>
    %cst_7 = arith.constant 0.000000e+00 : f32
    %9 = vector.broadcast %cst_7 : f32 to vector<22x32xf32>
    %c0_8 = arith.constant 0 : index
    %c0_9 = arith.constant 0 : index
    %10 = vector.load %arg18[%c0_8, %c0_9] : memref<22x32xf32, #tpu.memory_space<vmem>>, vector<22x32xf32>
    tpu.vector_store %arg18[%c0_8, %c0_9], %9 {strides = array<i32>} : memref<22x32xf32, #tpu.memory_space<vmem>>, vector<22x32xf32>,
    %c2 = arith.constant 2 : index
    %c0_10 = arith.constant 0 : index
    %11 = vector.load %arg18[%c2, %c0_10] : memref<22x32xf32, #tpu.memory_space<vmem>>, vector<18x32xf32>
    tpu.vector_store %arg18[%c2, %c0_10], %8 {strides = array<i32>} : memref<22x32xf32, #tpu.memory_space<vmem>>, vector<18x32xf32>,
    %c0_11 = arith.constant 0 : index
    %c0_12 = arith.constant 0 : index
    %12 = vector.load %arg18[%c0_11, %c0_12] : memref<22x32xf32, #tpu.memory_space<vmem>>, vector<18x32xf32>
    %c0_13 = arith.constant 0 : index
    %c0_14 = arith.constant 0 : index
    %c0_15 = arith.constant 0 : index
    %13 = vector.load %arg4[%c0_13, %c0_14, %c0_15] : memref<5x32x64xf32, #tpu.memory_space<vmem>>, vector<1x32x64xf32>
    %14 = vector.shape_cast %13 : vector<1x32x64xf32> to vector<32x64xf32>
    %cst_16 = arith.constant dense<0.000000e+00> : vector<18x64xf32>
    %15 = tpu.matmul %12, %14, %cst_16 {dimension_numbers = #tpu.dot_dimension_numbers<[1], [0], [0], [1], [0, 0, 1, 1], [], []>} : vector<18x32xf32>, vector<32x64xf32>, vector<18x64xf32> -> vector<18x64xf32>
    %c0_17 = arith.constant 0 : index
    %c0_18 = arith.constant 0 : index
    %16 = vector.load %arg5[%c0_17, %c0_18] : memref<1x64xf32, #tpu.memory_space<vmem>>, vector<1x64xf32>
    %17 = vector.broadcast %16 : vector<1x64xf32> to vector<18x64xf32>
    %18 = arith.addf %15, %17 : vector<18x64xf32>
    %c1 = arith.constant 1 : index
    %c0_19 = arith.constant 0 : index
    %19 = vector.load %arg18[%c1, %c0_19] : memref<22x32xf32, #tpu.memory_space<vmem>>, vector<18x32xf32>
    %c1_20 = arith.constant 1 : index
    %c0_21 = arith.constant 0 : index
    %c0_22 = arith.constant 0 : index
    %20 = vector.load %arg4[%c1_20, %c0_21, %c0_22] : memref<5x32x64xf32, #tpu.memory_space<vmem>>, vector<1x32x64xf32>
    %21 = vector.shape_cast %20 : vector<1x32x64xf32> to vector<32x64xf32>
    %cst_23 = arith.constant dense<0.000000e+00> : vector<18x64xf32>
    %22 = tpu.matmul %19, %21, %cst_23 {dimension_numbers = #tpu.dot_dimension_numbers<[1], [0], [0], [1], [0, 0, 1, 1], [], []>} : vector<18x32xf32>, vector<32x64xf32>, vector<18x64xf32> -> vector<18x64xf32>
    %23 = arith.addf %18, %22 : vector<18x64xf32>
    %c2_24 = arith.constant 2 : index
    %c0_25 = arith.constant 0 : index
    %24 = vector.load %arg18[%c2_24, %c0_25] : memref<22x32xf32, #tpu.memory_space<vmem>>, vector<18x32xf32>
    %c2_26 = arith.constant 2 : index
    %c0_27 = arith.constant 0 : index
    %c0_28 = arith.constant 0 : index
    %25 = vector.load %arg4[%c2_26, %c0_27, %c0_28] : memref<5x32x64xf32, #tpu.memory_space<vmem>>, vector<1x32x64xf32>
    %26 = vector.shape_cast %25 : vector<1x32x64xf32> to vector<32x64xf32>
    %cst_29 = arith.constant dense<0.000000e+00> : vector<18x64xf32>
    %27 = tpu.matmul %24, %26, %cst_29 {dimension_numbers = #tpu.dot_dimension_numbers<[1], [0], [0], [1], [0, 0, 1, 1], [], []>} : vector<18x32xf32>, vector<32x64xf32>, vector<18x64xf32> -> vector<18x64xf32>
    %28 = arith.addf %23, %27 : vector<18x64xf32>
    %c3 = arith.constant 3 : index
    %c0_30 = arith.constant 0 : index
    %29 = vector.load %arg18[%c3, %c0_30] : memref<22x32xf32, #tpu.memory_space<vmem>>, vector<18x32xf32>
    %c3_31 = arith.constant 3 : index
    %c0_32 = arith.constant 0 : index
    %c0_33 = arith.constant 0 : index
    %30 = vector.load %arg4[%c3_31, %c0_32, %c0_33] : memref<5x32x64xf32, #tpu.memory_space<vmem>>, vector<1x32x64xf32>
    %31 = vector.shape_cast %30 : vector<1x32x64xf32> to vector<32x64xf32>
    %cst_34 = arith.constant dense<0.000000e+00> : vector<18x64xf32>
    %32 = tpu.matmul %29, %31, %cst_34 {dimension_numbers = #tpu.dot_dimension_numbers<[1], [0], [0], [1], [0, 0, 1, 1], [], []>} : vector<18x32xf32>, vector<32x64xf32>, vector<18x64xf32> -> vector<18x64xf32>
    %33 = arith.addf %28, %32 : vector<18x64xf32>
    %c4 = arith.constant 4 : index
    %c0_35 = arith.constant 0 : index
    %34 = vector.load %arg18[%c4, %c0_35] : memref<22x32xf32, #tpu.memory_space<vmem>>, vector<18x32xf32>
    %c4_36 = arith.constant 4 : index
    %c0_37 = arith.constant 0 : index
    %c0_38 = arith.constant 0 : index
    %35 = vector.load %arg4[%c4_36, %c0_37, %c0_38] : memref<5x32x64xf32, #tpu.memory_space<vmem>>, vector<1x32x64xf32>
    %36 = vector.shape_cast %35 : vector<1x32x64xf32> to vector<32x64xf32>
    %cst_39 = arith.constant dense<0.000000e+00> : vector<18x64xf32>
    %37 = tpu.matmul %34, %36, %cst_39 {dimension_numbers = #tpu.dot_dimension_numbers<[1], [0], [0], [1], [0, 0, 1, 1], [], []>} : vector<18x32xf32>, vector<32x64xf32>, vector<18x64xf32> -> vector<18x64xf32>
    %38 = arith.addf %33, %37 : vector<18x64xf32>
    %c0_40 = arith.constant 0 : index
    %c0_41 = arith.constant 0 : index
    %39 = vector.load %arg12[%c0_40, %c0_41] : memref<10x18xf32, #tpu.memory_space<vmem>>, vector<10x18xf32>
    %cst_42 = arith.constant dense<0.000000e+00> : vector<10x64xf32>
    %40 = tpu.matmul %39, %38, %cst_42 {dimension_numbers = #tpu.dot_dimension_numbers<[1], [0], [0], [1], [0, 0, 1, 1], [], []>} : vector<10x18xf32>, vector<18x64xf32>, vector<10x64xf32> -> vector<10x64xf32>
    %cst_43 = arith.constant 0.000000e+00 : f32
    %41 = vector.broadcast %cst_43 : f32 to vector<10x64xf32>
    %42 = arith.maximumf %40, %41 : vector<10x64xf32>
    %cst_44 = arith.constant 0.000000e+00 : f32
    %43 = vector.broadcast %cst_44 : f32 to vector<12x64xf32>
    %c0_45 = arith.constant 0 : index
    %c0_46 = arith.constant 0 : index
    %44 = vector.load %arg19[%c0_45, %c0_46] : memref<12x64xf32, #tpu.memory_space<vmem>>, vector<12x64xf32>
    tpu.vector_store %arg19[%c0_45, %c0_46], %43 {strides = array<i32>} : memref<12x64xf32, #tpu.memory_space<vmem>>, vector<12x64xf32>,
    %c1_47 = arith.constant 1 : index
    %c0_48 = arith.constant 0 : index
    %45 = vector.load %arg19[%c1_47, %c0_48] : memref<12x64xf32, #tpu.memory_space<vmem>>, vector<10x64xf32>
    tpu.vector_store %arg19[%c1_47, %c0_48], %42 {strides = array<i32>} : memref<12x64xf32, #tpu.memory_space<vmem>>, vector<10x64xf32>,
    %c0_49 = arith.constant 0 : index
    %c0_50 = arith.constant 0 : index
    %46 = vector.load %arg19[%c0_49, %c0_50] : memref<12x64xf32, #tpu.memory_space<vmem>>, vector<10x64xf32>
    %c0_51 = arith.constant 0 : index
    %c0_52 = arith.constant 0 : index
    %c0_53 = arith.constant 0 : index
    %47 = vector.load %arg6[%c0_51, %c0_52, %c0_53] : memref<3x64x128xf32, #tpu.memory_space<vmem>>, vector<1x64x128xf32>
    %48 = vector.shape_cast %47 : vector<1x64x128xf32> to vector<64x128xf32>
    %cst_54 = arith.constant dense<0.000000e+00> : vector<10x128xf32>
    %49 = tpu.matmul %46, %48, %cst_54 {dimension_numbers = #tpu.dot_dimension_numbers<[1], [0], [0], [1], [0, 0, 1, 1], [], []>} : vector<10x64xf32>, vector<64x128xf32>, vector<10x128xf32> -> vector<10x128xf32>
    %c0_55 = arith.constant 0 : index
    %c0_56 = arith.constant 0 : index
    %50 = vector.load %arg7[%c0_55, %c0_56] : memref<1x128xf32, #tpu.memory_space<vmem>>, vector<1x128xf32>
    %51 = vector.broadcast %50 : vector<1x128xf32> to vector<10x128xf32>
    %52 = arith.addf %49, %51 : vector<10x128xf32>
    %c1_57 = arith.constant 1 : index
    %c0_58 = arith.constant 0 : index
    %53 = vector.load %arg19[%c1_57, %c0_58] : memref<12x64xf32, #tpu.memory_space<vmem>>, vector<10x64xf32>
    %c1_59 = arith.constant 1 : index
    %c0_60 = arith.constant 0 : index
    %c0_61 = arith.constant 0 : index
    %54 = vector.load %arg6[%c1_59, %c0_60, %c0_61] : memref<3x64x128xf32, #tpu.memory_space<vmem>>, vector<1x64x128xf32>
    %55 = vector.shape_cast %54 : vector<1x64x128xf32> to vector<64x128xf32>
    %cst_62 = arith.constant dense<0.000000e+00> : vector<10x128xf32>
    %56 = tpu.matmul %53, %55, %cst_62 {dimension_numbers = #tpu.dot_dimension_numbers<[1], [0], [0], [1], [0, 0, 1, 1], [], []>} : vector<10x64xf32>, vector<64x128xf32>, vector<10x128xf32> -> vector<10x128xf32>
    %57 = arith.addf %52, %56 : vector<10x128xf32>
    %c2_63 = arith.constant 2 : index
    %c0_64 = arith.constant 0 : index
    %58 = vector.load %arg19[%c2_63, %c0_64] : memref<12x64xf32, #tpu.memory_space<vmem>>, vector<10x64xf32>
    %c2_65 = arith.constant 2 : index
    %c0_66 = arith.constant 0 : index
    %c0_67 = arith.constant 0 : index
    %59 = vector.load %arg6[%c2_65, %c0_66, %c0_67] : memref<3x64x128xf32, #tpu.memory_space<vmem>>, vector<1x64x128xf32>
    %60 = vector.shape_cast %59 : vector<1x64x128xf32> to vector<64x128xf32>
    %cst_68 = arith.constant dense<0.000000e+00> : vector<10x128xf32>
    %61 = tpu.matmul %58, %60, %cst_68 {dimension_numbers = #tpu.dot_dimension_numbers<[1], [0], [0], [1], [0, 0, 1, 1], [], []>} : vector<10x64xf32>, vector<64x128xf32>, vector<10x128xf32> -> vector<10x128xf32>
    %62 = arith.addf %57, %61 : vector<10x128xf32>
    %c0_69 = arith.constant 0 : index
    %c0_70 = arith.constant 0 : index
    %63 = vector.load %arg13[%c0_69, %c0_70] : memref<6x10xf32, #tpu.memory_space<vmem>>, vector<6x10xf32>
    %cst_71 = arith.constant dense<0.000000e+00> : vector<6x128xf32>
    %64 = tpu.matmul %63, %62, %cst_71 {dimension_numbers = #tpu.dot_dimension_numbers<[1], [0], [0], [1], [0, 0, 1, 1], [], []>} : vector<6x10xf32>, vector<10x128xf32>, vector<6x128xf32> -> vector<6x128xf32>
    %cst_72 = arith.constant 0.000000e+00 : f32
    %65 = vector.broadcast %cst_72 : f32 to vector<6x128xf32>
    %66 = arith.maximumf %64, %65 : vector<6x128xf32>
    %cst_73 = arith.constant 0.000000e+00 : f32
    %67 = vector.broadcast %cst_73 : f32 to vector<8x128xf32>
    %c0_74 = arith.constant 0 : index
    %c0_75 = arith.constant 0 : index
    %68 = vector.load %arg20[%c0_74, %c0_75] : memref<8x128xf32, #tpu.memory_space<vmem>>, vector<8x128xf32>
    tpu.vector_store %arg20[%c0_74, %c0_75], %67 {strides = array<i32>} : memref<8x128xf32, #tpu.memory_space<vmem>>, vector<8x128xf32>,
    %c1_76 = arith.constant 1 : index
    %c0_77 = arith.constant 0 : index
    %69 = vector.load %arg20[%c1_76, %c0_77] : memref<8x128xf32, #tpu.memory_space<vmem>>, vector<6x128xf32>
    tpu.vector_store %arg20[%c1_76, %c0_77], %66 {strides = array<i32>} : memref<8x128xf32, #tpu.memory_space<vmem>>, vector<6x128xf32>,
    %c0_78 = arith.constant 0 : index
    %c0_79 = arith.constant 0 : index
    %70 = vector.load %arg20[%c0_78, %c0_79] : memref<8x128xf32, #tpu.memory_space<vmem>>, vector<6x128xf32>
    %c0_80 = arith.constant 0 : index
    %c0_81 = arith.constant 0 : index
    %c0_82 = arith.constant 0 : index
    %71 = vector.load %arg8[%c0_80, %c0_81, %c0_82] : memref<3x128x256xf32, #tpu.memory_space<vmem>>, vector<1x128x256xf32>
    %72 = vector.shape_cast %71 : vector<1x128x256xf32> to vector<128x256xf32>
    %cst_83 = arith.constant dense<0.000000e+00> : vector<6x256xf32>
    %73 = tpu.matmul %70, %72, %cst_83 {dimension_numbers = #tpu.dot_dimension_numbers<[1], [0], [0], [1], [0, 0, 1, 1], [], []>} : vector<6x128xf32>, vector<128x256xf32>, vector<6x256xf32> -> vector<6x256xf32>
    %c0_84 = arith.constant 0 : index
    %c0_85 = arith.constant 0 : index
    %74 = vector.load %arg9[%c0_84, %c0_85] : memref<1x256xf32, #tpu.memory_space<vmem>>, vector<1x256xf32>
    %75 = vector.broadcast %74 : vector<1x256xf32> to vector<6x256xf32>
    %76 = arith.addf %73, %75 : vector<6x256xf32>
    %c1_86 = arith.constant 1 : index
    %c0_87 = arith.constant 0 : index
    %77 = vector.load %arg20[%c1_86, %c0_87] : memref<8x128xf32, #tpu.memory_space<vmem>>, vector<6x128xf32>
    %c1_88 = arith.constant 1 : index
    %c0_89 = arith.constant 0 : index
    %c0_90 = arith.constant 0 : index
    %78 = vector.load %arg8[%c1_88, %c0_89, %c0_90] : memref<3x128x256xf32, #tpu.memory_space<vmem>>, vector<1x128x256xf32>
    %79 = vector.shape_cast %78 : vector<1x128x256xf32> to vector<128x256xf32>
    %cst_91 = arith.constant dense<0.000000e+00> : vector<6x256xf32>
    %80 = tpu.matmul %77, %79, %cst_91 {dimension_numbers = #tpu.dot_dimension_numbers<[1], [0], [0], [1], [0, 0, 1, 1], [], []>} : vector<6x128xf32>, vector<128x256xf32>, vector<6x256xf32> -> vector<6x256xf32>
    %81 = arith.addf %76, %80 : vector<6x256xf32>
    %c2_92 = arith.constant 2 : index
    %c0_93 = arith.constant 0 : index
    %82 = vector.load %arg20[%c2_92, %c0_93] : memref<8x128xf32, #tpu.memory_space<vmem>>, vector<6x128xf32>
    %c2_94 = arith.constant 2 : index
    %c0_95 = arith.constant 0 : index
    %c0_96 = arith.constant 0 : index
    %83 = vector.load %arg8[%c2_94, %c0_95, %c0_96] : memref<3x128x256xf32, #tpu.memory_space<vmem>>, vector<1x128x256xf32>
    %84 = vector.shape_cast %83 : vector<1x128x256xf32> to vector<128x256xf32>
    %cst_97 = arith.constant dense<0.000000e+00> : vector<6x256xf32>
    %85 = tpu.matmul %82, %84, %cst_97 {dimension_numbers = #tpu.dot_dimension_numbers<[1], [0], [0], [1], [0, 0, 1, 1], [], []>} : vector<6x128xf32>, vector<128x256xf32>, vector<6x256xf32> -> vector<6x256xf32>
    %86 = arith.addf %81, %85 : vector<6x256xf32>
    %cst_98 = arith.constant 0.000000e+00 : f32
    %87 = vector.broadcast %cst_98 : f32 to vector<6x256xf32>
    %88 = arith.maximumf %86, %87 : vector<6x256xf32>
    %cst_99 = arith.constant 0.000000e+00 : f32
    %89 = vector.broadcast %cst_99 : f32 to vector<8x256xf32>
    %c0_100 = arith.constant 0 : index
    %c0_101 = arith.constant 0 : index
    %90 = vector.load %arg21[%c0_100, %c0_101] : memref<8x256xf32, #tpu.memory_space<vmem>>, vector<8x256xf32>
    tpu.vector_store %arg21[%c0_100, %c0_101], %89 {strides = array<i32>} : memref<8x256xf32, #tpu.memory_space<vmem>>, vector<8x256xf32>,
    %c1_102 = arith.constant 1 : index
    %c0_103 = arith.constant 0 : index
    %91 = vector.load %arg21[%c1_102, %c0_103] : memref<8x256xf32, #tpu.memory_space<vmem>>, vector<6x256xf32>
    tpu.vector_store %arg21[%c1_102, %c0_103], %88 {strides = array<i32>} : memref<8x256xf32, #tpu.memory_space<vmem>>, vector<6x256xf32>,
    %c0_104 = arith.constant 0 : index
    %c0_105 = arith.constant 0 : index
    %92 = vector.load %arg21[%c0_104, %c0_105] : memref<8x256xf32, #tpu.memory_space<vmem>>, vector<6x256xf32>
    %c0_106 = arith.constant 0 : index
    %c0_107 = arith.constant 0 : index
    %c0_108 = arith.constant 0 : index
    %93 = vector.load %arg10[%c0_106, %c0_107, %c0_108] : memref<3x256x256xf32, #tpu.memory_space<vmem>>, vector<1x256x256xf32>
    %94 = vector.shape_cast %93 : vector<1x256x256xf32> to vector<256x256xf32>
    %cst_109 = arith.constant dense<0.000000e+00> : vector<6x256xf32>
    %95 = tpu.matmul %92, %94, %cst_109 {dimension_numbers = #tpu.dot_dimension_numbers<[1], [0], [0], [1], [0, 0, 1, 1], [], []>} : vector<6x256xf32>, vector<256x256xf32>, vector<6x256xf32> -> vector<6x256xf32>
    %c0_110 = arith.constant 0 : index
    %c0_111 = arith.constant 0 : index
    %96 = vector.load %arg11[%c0_110, %c0_111] : memref<1x256xf32, #tpu.memory_space<vmem>>, vector<1x256xf32>
    %97 = vector.broadcast %96 : vector<1x256xf32> to vector<6x256xf32>
    %98 = arith.addf %95, %97 : vector<6x256xf32>
    %c1_112 = arith.constant 1 : index
    %c0_113 = arith.constant 0 : index
    %99 = vector.load %arg21[%c1_112, %c0_113] : memref<8x256xf32, #tpu.memory_space<vmem>>, vector<6x256xf32>
    %c1_114 = arith.constant 1 : index
    %c0_115 = arith.constant 0 : index
    %c0_116 = arith.constant 0 : index
    %100 = vector.load %arg10[%c1_114, %c0_115, %c0_116] : memref<3x256x256xf32, #tpu.memory_space<vmem>>, vector<1x256x256xf32>
    %101 = vector.shape_cast %100 : vector<1x256x256xf32> to vector<256x256xf32>
    %cst_117 = arith.constant dense<0.000000e+00> : vector<6x256xf32>
    %102 = tpu.matmul %99, %101, %cst_117 {dimension_numbers = #tpu.dot_dimension_numbers<[1], [0], [0], [1], [0, 0, 1, 1], [], []>} : vector<6x256xf32>, vector<256x256xf32>, vector<6x256xf32> -> vector<6x256xf32>
    %103 = arith.addf %98, %102 : vector<6x256xf32>
    %c2_118 = arith.constant 2 : index
    %c0_119 = arith.constant 0 : index
    %104 = vector.load %arg21[%c2_118, %c0_119] : memref<8x256xf32, #tpu.memory_space<vmem>>, vector<6x256xf32>
    %c2_120 = arith.constant 2 : index
    %c0_121 = arith.constant 0 : index
    %c0_122 = arith.constant 0 : index
    %105 = vector.load %arg10[%c2_120, %c0_121, %c0_122] : memref<3x256x256xf32, #tpu.memory_space<vmem>>, vector<1x256x256xf32>
    %106 = vector.shape_cast %105 : vector<1x256x256xf32> to vector<256x256xf32>
    %cst_123 = arith.constant dense<0.000000e+00> : vector<6x256xf32>
    %107 = tpu.matmul %104, %106, %cst_123 {dimension_numbers = #tpu.dot_dimension_numbers<[1], [0], [0], [1], [0, 0, 1, 1], [], []>} : vector<6x256xf32>, vector<256x256xf32>, vector<6x256xf32> -> vector<6x256xf32>
    %108 = arith.addf %103, %107 : vector<6x256xf32>
    %c0_124 = arith.constant 0 : index
    %c0_125 = arith.constant 0 : index
    %109 = vector.load %arg14[%c0_124, %c0_125] : memref<3x6xf32, #tpu.memory_space<vmem>>, vector<3x6xf32>
    %cst_126 = arith.constant dense<0.000000e+00> : vector<3x256xf32>
    %110 = tpu.matmul %109, %108, %cst_126 {dimension_numbers = #tpu.dot_dimension_numbers<[1], [0], [0], [1], [0, 0, 1, 1], [], []>} : vector<3x6xf32>, vector<6x256xf32>, vector<3x256xf32> -> vector<3x256xf32>
    %cst_127 = arith.constant 0.000000e+00 : f32
    %111 = vector.broadcast %cst_127 : f32 to vector<3x256xf32>
    %112 = arith.maximumf %110, %111 : vector<3x256xf32>
    %c0_128 = arith.constant 0 : index
    %c0_129 = arith.constant 0 : index
    %113 = vector.load %arg16[%c0_128, %c0_129] : memref<1x4xf32, #tpu.memory_space<vmem>>, vector<1x4xf32>
    %114 = vector.extract_strided_slice %112 {offsets = [0, 0], sizes = [1, 256], strides = [1, 1]} : vector<3x256xf32> to vector<1x256xf32>
    %c0_130 = arith.constant 0 : index
    %c0_131 = arith.constant 0 : index
    %c0_132 = arith.constant 0 : index
    %115 = vector.load %arg15[%c0_130, %c0_131, %c0_132] : memref<3x256x4xf32, #tpu.memory_space<vmem>>, vector<1x256x4xf32>
    %116 = vector.shape_cast %115 : vector<1x256x4xf32> to vector<256x4xf32>
    %cst_133 = arith.constant dense<0.000000e+00> : vector<1x4xf32>
    %117 = tpu.matmul %114, %116, %cst_133 {dimension_numbers = #tpu.dot_dimension_numbers<[1], [0], [0], [1], [0, 0, 1, 1], [], []>} : vector<1x256xf32>, vector<256x4xf32>, vector<1x4xf32> -> vector<1x4xf32>
    %118 = arith.addf %113, %117 : vector<1x4xf32>
    %119 = vector.extract_strided_slice %112 {offsets = [1, 0], sizes = [1, 256], strides = [1, 1]} : vector<3x256xf32> to vector<1x256xf32>
    %c1_134 = arith.constant 1 : index
    %c0_135 = arith.constant 0 : index
    %c0_136 = arith.constant 0 : index
    %120 = vector.load %arg15[%c1_134, %c0_135, %c0_136] : memref<3x256x4xf32, #tpu.memory_space<vmem>>, vector<1x256x4xf32>
    %121 = vector.shape_cast %120 : vector<1x256x4xf32> to vector<256x4xf32>
    %cst_137 = arith.constant dense<0.000000e+00> : vector<1x4xf32>
    %122 = tpu.matmul %119, %121, %cst_137 {dimension_numbers = #tpu.dot_dimension_numbers<[1], [0], [0], [1], [0, 0, 1, 1], [], []>} : vector<1x256xf32>, vector<256x4xf32>, vector<1x4xf32> -> vector<1x4xf32>
    %123 = arith.addf %118, %122 : vector<1x4xf32>
    %124 = vector.extract_strided_slice %112 {offsets = [2, 0], sizes = [1, 256], strides = [1, 1]} : vector<3x256xf32> to vector<1x256xf32>
    %c2_138 = arith.constant 2 : index
    %c0_139 = arith.constant 0 : index
    %c0_140 = arith.constant 0 : index
    %125 = vector.load %arg15[%c2_138, %c0_139, %c0_140] : memref<3x256x4xf32, #tpu.memory_space<vmem>>, vector<1x256x4xf32>
    %126 = vector.shape_cast %125 : vector<1x256x4xf32> to vector<256x4xf32>
    %cst_141 = arith.constant dense<0.000000e+00> : vector<1x4xf32>
    %127 = tpu.matmul %124, %126, %cst_141 {dimension_numbers = #tpu.dot_dimension_numbers<[1], [0], [0], [1], [0, 0, 1, 1], [], []>} : vector<1x256xf32>, vector<256x4xf32>, vector<1x4xf32> -> vector<1x4xf32>
    %128 = arith.addf %123, %127 : vector<1x4xf32>
    %c0_142 = arith.constant 0 : index
    %c0_143 = arith.constant 0 : index
    %c0_144 = arith.constant 0 : index
    %129 = vector.load %arg17[%c0_142, %c0_143, %c0_144] : memref<1x1x4xf32, #tpu.memory_space<vmem>>, vector<1x1x4xf32>
    %130 = vector.shape_cast %129 : vector<1x1x4xf32> to vector<1x4xf32>
    %131 = vector.shape_cast %128 : vector<1x4xf32> to vector<1x1x4xf32>
    tpu.vector_store %arg17[%c0_142, %c0_143, %c0_144], %131 {strides = array<i32>} : memref<1x1x4xf32, #tpu.memory_space<vmem>>, vector<1x1x4xf32>,
    return
  }
  func.func @transform_0(%arg0: i32) -> (i32, i32, i32) {
    %c0_i32 = arith.constant 0 : i32
    %c0_i32_0 = arith.constant 0 : i32
    %c0_i32_1 = arith.constant 0 : i32
    return %arg0, %c0_i32, %c0_i32_0 : i32, i32, i32
  }
  func.func @transform_1(%arg0: i32) -> (i32, i32) {
    %c0_i32 = arith.constant 0 : i32
    %c0_i32_0 = arith.constant 0 : i32
    %c0_i32_1 = arith.constant 0 : i32
    return %c0_i32, %c0_i32_0 : i32, i32
  }
  func.func @transform_2(%arg0: i32) -> (i32, i32) {
    %c0_i32 = arith.constant 0 : i32
    %c0_i32_0 = arith.constant 0 : i32
    %c0_i32_1 = arith.constant 0 : i32
    return %c0_i32, %c0_i32_0 : i32, i32
  }
  func.func @transform_3(%arg0: i32) -> (i32, i32, i32) {
    %c0_i32 = arith.constant 0 : i32
    %c0_i32_0 = arith.constant 0 : i32
    %c0_i32_1 = arith.constant 0 : i32
    %c0_i32_2 = arith.constant 0 : i32
    return %c0_i32, %c0_i32_0, %c0_i32_1 : i32, i32, i32
  }
  func.func @transform_4(%arg0: i32) -> (i32, i32) {
    %c0_i32 = arith.constant 0 : i32
    %c0_i32_0 = arith.constant 0 : i32
    %c0_i32_1 = arith.constant 0 : i32
    return %c0_i32, %c0_i32_0 : i32, i32
  }
  func.func @transform_5(%arg0: i32) -> (i32, i32, i32) {
    %c0_i32 = arith.constant 0 : i32
    %c0_i32_0 = arith.constant 0 : i32
    %c0_i32_1 = arith.constant 0 : i32
    %c0_i32_2 = arith.constant 0 : i32
    return %c0_i32, %c0_i32_0, %c0_i32_1 : i32, i32, i32
  }
  func.func @transform_6(%arg0: i32) -> (i32, i32) {
    %c0_i32 = arith.constant 0 : i32
    %c0_i32_0 = arith.constant 0 : i32
    %c0_i32_1 = arith.constant 0 : i32
    return %c0_i32, %c0_i32_0 : i32, i32
  }
  func.func @transform_7(%arg0: i32) -> (i32, i32, i32) {
    %c0_i32 = arith.constant 0 : i32
    %c0_i32_0 = arith.constant 0 : i32
    %c0_i32_1 = arith.constant 0 : i32
    %c0_i32_2 = arith.constant 0 : i32
    return %c0_i32, %c0_i32_0, %c0_i32_1 : i32, i32, i32
  }
  func.func @transform_8(%arg0: i32) -> (i32, i32) {
    %c0_i32 = arith.constant 0 : i32
    %c0_i32_0 = arith.constant 0 : i32
    %c0_i32_1 = arith.constant 0 : i32
    return %c0_i32, %c0_i32_0 : i32, i32
  }
  func.func @transform_9(%arg0: i32) -> (i32, i32, i32) {
    %c0_i32 = arith.constant 0 : i32
    %c0_i32_0 = arith.constant 0 : i32
    %c0_i32_1 = arith.constant 0 : i32
    %c0_i32_2 = arith.constant 0 : i32
    return %c0_i32, %c0_i32_0, %c0_i32_1 : i32, i32, i32
  }
  func.func @transform_10(%arg0: i32) -> (i32, i32) {
    %c0_i32 = arith.constant 0 : i32
    %c0_i32_0 = arith.constant 0 : i32
    %c0_i32_1 = arith.constant 0 : i32
    return %c0_i32, %c0_i32_0 : i32, i32
  }
  func.func @transform_11(%arg0: i32) -> (i32, i32) {
    %c0_i32 = arith.constant 0 : i32
    %c0_i32_0 = arith.constant 0 : i32
    %c0_i32_1 = arith.constant 0 : i32
    return %c0_i32, %c0_i32_0 : i32, i32
  }
  func.func @transform_12(%arg0: i32) -> (i32, i32) {
    %c0_i32 = arith.constant 0 : i32
    %c0_i32_0 = arith.constant 0 : i32
    %c0_i32_1 = arith.constant 0 : i32
    return %c0_i32, %c0_i32_0 : i32, i32
  }
  func.func @transform_13(%arg0: i32) -> (i32, i32) {
    %c0_i32 = arith.constant 0 : i32
    %c0_i32_0 = arith.constant 0 : i32
    %c0_i32_1 = arith.constant 0 : i32
    return %c0_i32, %c0_i32_0 : i32, i32
  }
  func.func @transform_14(%arg0: i32) -> (i32, i32, i32) {
    %c0_i32 = arith.constant 0 : i32
    %c0_i32_0 = arith.constant 0 : i32
    %c0_i32_1 = arith.constant 0 : i32
    %c0_i32_2 = arith.constant 0 : i32
    return %c0_i32, %c0_i32_0, %c0_i32_1 : i32, i32, i32
  }
  func.func @transform_15(%arg0: i32) -> (i32, i32) {
    %c0_i32 = arith.constant 0 : i32
    %c0_i32_0 = arith.constant 0 : i32
    %c0_i32_1 = arith.constant 0 : i32
    return %c0_i32, %c0_i32_0 : i32, i32
  }
  func.func @transform_16(%arg0: i32) -> (i32, i32, i32) {
    %c0_i32 = arith.constant 0 : i32
    %c0_i32_0 = arith.constant 0 : i32
    %c0_i32_1 = arith.constant 0 : i32
    return %arg0, %c0_i32, %c0_i32_0 : i32, i32, i32
  }
}

</mosaic_0001>

<bundles_post_ra>
// kernel: forward.1
= control target key start
LH: loop header
LB: loop body
LE: loop exit
PB: predicated region body
PF: predicated region fallthrough
CT: control target
= control target key end

     0   :  { %s6531_s0 = inlined_call_operand.vmem [shape: f32[2,18,15], index: 0, kind: input, shape index: {}]   ;;  %s6532_s1 = inlined_call_operand.vmem [shape: f32[15,32], index: 1, kind: input, shape index: {}]   ;;  %s6533_s2 = inlined_call_operand.hbm [shape: f32[1,32], index: 2, kind: input, shape index: {}]   ;;  %s6534_s3 = inlined_call_operand.hbm [shape: f32[5,32,64], index: 3, kind: input, shape index: {}]   ;;  %s6535_s4 = inlined_call_operand.hbm [shape: f32[1,64], index: 4, kind: input, shape index: {}]   ;;  %s6536_s5 = inlined_call_operand.vmem [shape: f32[3,64,128], index: 5, kind: input, shape index: {}]   ;;  %s6537_s6 = inlined_call_operand.hbm [shape: f32[1,128], index: 6, kind: input, shape index: {}]   ;;  %s6538_s7 = inlined_call_operand.vmem [shape: f32[3,128,256], index: 7, kind: input, shape index: {}]   ;;  %s6539_s8 = inlined_call_operand.hbm [shape: f32[1,256], index: 8, kind: input, shape index: {}]   ;;  %s6540_s9 = inlined_call_operand.vmem [shape: f32[3,256,256], index: 9, kind: input, shape index: {}]   ;;  %s6541_s10 = inlined_call_operand.hbm [shape: f32[1,256], index: 10, kind: input, shape index: {}]   ;;  %s6542_s11 = inlined_call_operand.hbm [shape: f32[10,18], index: 11, kind: input, shape index: {}]   ;;  %s6543_s12 = inlined_call_operand.hbm [shape: f32[6,10], index: 12, kind: input, shape index: {}]   ;;  %s6544_s13 = inlined_call_operand.vmem [shape: f32[3,6], index: 13, kind: input, shape index: {}]   ;;  %s6545_s14 = inlined_call_operand.vmem [shape: f32[3,256,4], index: 14, kind: input, shape index: {}]   ;;  %s6546_s15 = inlined_call_operand.hbm [shape: f32[1,4], index: 15, kind: input, shape index: {}]   ;;  %s6547_s16 = inlined_call_operand.hbm [shape: f32[2,1,4], index: 16, kind: output, shape index: {}]  }
   0x1   :  { %6563 = sst [smem:[#allocation36_spill]] %s6531_s0 }
   0x2   :  { %6564 = sst [smem:[#allocation37_spill]] %s6544_s13 }
   0x3   :  { %6565 = sst [smem:[#allocation38_spill]] %s6545_s14 }
   0x4   :  { %6566 = sst [smem:[#allocation39_spill]] %s6547_s16 }
   0x5   :  { %21 = vsyncpa [#allocation7], 0 }
   0x6   :  { %22 = vsyncpa [#allocation10], 0 }
   0x7   :  { %23 = vsyncpa [#allocation13], 0 }
   0x8   :  { %24 = vsyncpa [#allocation16], 0 }
   0x9   :  { %25 = vsyncpa [#allocation19], 0 }
   0xa   :  { %26 = vsyncpa [#allocation8], 0 }
   0xb   :  { %28 = vsyncpa [#allocation8 + $0x1], 0  ;;  %s4853_s21 = smov 0   ;;  %s4855_s22 = smov 0  }
   0xc   :  { %s4857_s23 = smov 0   ;;  %s4859_s24 = smov 0  }
   0xd LB: > { %6567 = sst [smem:[#allocation28_spill]] %s4738_s21  ;;  %s4874_s25 = sadd.s32 4294967295, %s4750_s24   ;;  %s4750_s24 = sphi %s4859_s24, %s6604_s24   ;;  %s4746_s23 = sphi %s4857_s23, %s6607_s23   ;;  %s4742_s22 = sphi %s4855_s22, %s6606_s22   ;;  %s4738_s21 = sphi %s4853_s21, %s6605_s21  }
   0xe   : > { %6568 = sst [smem:[#allocation29_spill]] %s4742_s22  ;;  %s3069_s26 = sadd.s32 4294967294, %s4750_s24  }
   0xf   : > { %6569 = sst [smem:[#allocation30_spill]] %s4746_s23  ;;  %s4878_s27 = sadd.s32 1, %s4750_s24  }
  0x10   : > { %6570 = sst [smem:[#allocation31_spill]] %s4750_s24  ;;  %s382_s28 = sadd.s32 1, %s4746_s23 }
  0x11   : > { %6571 = sst [smem:[#allocation32_spill]] %s4878_s27  ;;  %s379_s29 = ssub.s32 %s4750_s24, %s4878_s27 }
  0x12   : > { %p392_p0 = scmp.ne.s32.totalorder %s4746_s23, %s4742_s22  ;;  %p380_p1 = scmp.eq.s32.totalorder %s379_s29, 0 }
  0x13   : > { %p393_p2 = scmp.eq.s32.totalorder %s4874_s25, 1  ;;  %p398_p3 = scmp.ne.s32.totalorder %s4742_s22, %s4738_s21 }
  0x14   : > { %p399_p4 = scmp.eq.s32.totalorder %s3069_s26, 1  ;;  %p3070_p7 = scmp.ge.s32.totalorder %s4750_s24, 1 }
  0x15   : > { %s4889_s30 = scalar_select %p380_p1, %s4746_s23, %s382_s28  }
  0x16   : > { %p4891_p5 = por %p393_p2, %p392_p0  ;;  %p4895_p6 = por %p399_p4, %p398_p3 }
  0x17   : > { %6572 = sst [smem:[#allocation33_spill]] %s4889_s30  ;;  %p406_p8 = scmp.lt.s32.totalorder %s4750_s24, 3 }
  0x18   : > { %s6573_s0 = scalar_select %p4891_p5, 1, 0 }
  0x19   : > { %s6575_s17 = scalar_select %p4895_p6, 1, 0 }
  0x1a   : > { %6574 = sst [smem:[#allocation34_spill]] %s6573_s0  ;;  %p6555_p9 = scmp.eq.s32.totalorder %s4874_s25, 0 }
  0x1b   : > { %6576 = sst [smem:[#allocation35_spill]] %s6575_s17  ;;  %p4902_p10 = pnand %p3070_p7, %p406_p8 }
  0x1c   : > { %s4752_s19 = smov [#allocation9]   ;;  %s4753_s28 = smov [#allocation12]  }
  0x1d   : > { %s6577_s18 = scalar_select %p4902_p10, 1, 0 }
  0x1e   : > { %s432_s20 = sshll.u32 %s4752_s19, 4  ;;  %p4317_p11 = pneg %p4902_p10  ;;  %s4908_s20 = int_to_ptr.vmem [resolvable:$true] %s432_s20 }
  0x1f   : > { %s460_s29 = sshll.u32 %s4753_s28, 4  ;;  %s4754_s30 = smov [#allocation15]   ;;  %s4916_s29 = int_to_ptr.vmem [resolvable:$true] %s460_s29 }
  0x20   : > { %p4912_p12 = pnand %p6555_p9, %p4317_p11  ;;  %s4918_s23 = sshll.u32 %s4754_s30, 4  ;;  %s489_s23 = int_to_ptr.vmem [resolvable:$true] %s4918_s23 }
  0x21   : > { %s4416_s19 = scalar_lea.hbm %s6534_s3, 2560 }
  0x22   : > { %p4417_p13 = scmp.ne.s32.totalorder %s6534_s3, %s4416_s19  ;;  %p4928_p0 = pneg %p4912_p12 }
  0x23   : > { %p4423_p3 = scmp.lt.u32.totalorder %s4416_s19, %s6534_s3 }
  0x24   : > { %p4419_p1 = pnand %p4928_p0, %p4417_p13 }
  0x26   : > { %p4420_p2 = pneg %p4419_p1 }
  0x28   : > { %p4425_p4 = pnand %p4423_p3, %p4420_p2 }
  0x2a   : > { %4428 = shalt.err (!%p4425_p4)
}
  0x2b   : > { %s4429_s21 = scalar_lea.vmem %s4908_s20, 2560  ;;  %p4437_p9 = scmp.lt.s32.totalorder %s4908_s20, %s4908_s20 }
  0x2c   : > { %p4430_p7 = scmp.ne.s32.totalorder %s4908_s20, %s4429_s21  ;;  %p4438_p6 = scmp.lt.s32.totalorder %s4429_s21, %s4429_s21 }
  0x2e   : > { %p4432_p8 = pnand %p4430_p7, %p4928_p0  ;;  %p4439_p13 = por %p4438_p6, %p4437_p9 }
  0x30   : > { %p4433_p11 = pneg %p4432_p8 }
  0x32   : > { %p4440_p1 = pnand %p4439_p13, %p4433_p11 }
  0x34   : > { %4443 = shalt.err (!%p4440_p1)
}
  0x35   : > { %s6562_s24 = smov 128   ;;  %s4756_s27 = smov 8  }
  0x36   : > { %4323 = dma.hbm_to_vmem [thread:$0]  (!%p4912_p12), %s6534_s3, 2560, %s4908_s20, [#allocation10], %s6562_s24, %s6562_s24, %s4756_s27  }
  0x37   : > { %s4444_s21 = scalar_lea.hbm %s6537_s6, 16 }
  0x38   : > { %p4445_p6 = scmp.ne.s32.totalorder %s6537_s6, %s4444_s21  ;;  %p4451_p3 = scmp.lt.u32.totalorder %s4444_s21, %s6537_s6 }
  0x3a   : > { %p4447_p9 = pnand %p4445_p6, %p4928_p0 }
  0x3c   : > { %p4448_p2 = pneg %p4447_p9 }
  0x3e   : > { %p4453_p4 = pnand %p4451_p3, %p4448_p2 }
  0x40   : > { %4456 = shalt.err (!%p4453_p4)
}
  0x41   : > { %s4457_s20 = scalar_lea.vmem %s4916_s29, 16  ;;  %s4464_s22 = scalar_lea.vmem %s4916_s29, 32 }
  0x42   : > { %p4458_p7 = scmp.ne.s32.totalorder %s4916_s29, %s4457_s20  ;;  %p4465_p13 = scmp.lt.s32.totalorder %s4916_s29, %s4916_s29 }
  0x43   : > { %p4466_p1 = scmp.lt.s32.totalorder %s4464_s22, %s4457_s20 }
  0x44   : > { %p4460_p8 = pnand %p4458_p7, %p4928_p0 }
  0x45   : > { %p4467_p6 = por %p4466_p1, %p4465_p13 }
  0x46   : > { %p4461_p11 = pneg %p4460_p8 }
  0x48   : > { %p4468_p9 = pnand %p4467_p6, %p4461_p11 }
  0x4a   : > { %4471 = shalt.err (!%p4468_p9)
}
  0x4b   : > { %4329 = dma.hbm_to_vmem [thread:$0]  (!%p4912_p12), %s6537_s6, 16, %s4916_s29, [#allocation13]  }
  0x4c   : > { %s4472_s19 = scalar_lea.hbm %s6541_s10, 32 }
  0x4d   : > { %p4473_p2 = scmp.ne.s32.totalorder %s6541_s10, %s4472_s19  ;;  %p4479_p7 = scmp.lt.u32.totalorder %s4472_s19, %s6541_s10 }
  0x4f   : > { %p4475_p3 = pnand %p4473_p2, %p4928_p0 }
  0x51   : > { %p4476_p4 = pneg %p4475_p3 }
  0x53   : > { %p4481_p8 = pnand %p4479_p7, %p4476_p4 }
  0x55   : > { %4484 = shalt.err (!%p4481_p8)
}
  0x56   : > { %s4485_s22 = scalar_lea.vmem %s489_s23, 32  ;;  %p4493_p6 = scmp.lt.s32.totalorder %s489_s23, %s489_s23 }
  0x57   : > { %p4486_p11 = scmp.ne.s32.totalorder %s489_s23, %s4485_s22  ;;  %p4494_p9 = scmp.lt.s32.totalorder %s4485_s22, %s4485_s22 }
  0x59   : > { %p4488_p13 = pnand %p4486_p11, %p4928_p0  ;;  %p4495_p5 = por %p4494_p9, %p4493_p6 }
  0x5b   : > { %p4489_p1 = pneg %p4488_p13 }
  0x5d   : > { %p4496_p10 = pnand %p4495_p5, %p4489_p1 }
  0x5f   : > { %4499 = shalt.err (!%p4496_p10)
}
  0x60   : > { %4335 = dma.hbm_to_vmem [thread:$0]  (!%p4912_p12), %s6541_s10, 32, %s489_s23, [#allocation16]  }
  0x61   : > { %s4757_s14 = smov [#allocation18]   ;;  %s4758_s17 = smov [#allocation6]  }
  0x62   : > { %s512_s0 = sshll.u32 %s4757_s14, 4  ;;  %s422_s19 = sshll.u32 %s4758_s17, 4  ;;  %s513_s0 = int_to_ptr.vmem [resolvable:$true] %s512_s0  ;;  %s423_s19 = int_to_ptr.vmem [resolvable:$true] %s422_s19 }
  0x63   : > { %s4500_s21 = scalar_lea.hbm %s6543_s12, 128 }
  0x64   : > { %p4501_p5 = scmp.ne.s32.totalorder %s6543_s12, %s4500_s21  ;;  %p4507_p3 = scmp.lt.u32.totalorder %s4500_s21, %s6543_s12 }
  0x66   : > { %p4503_p10 = pnand %p4501_p5, %p4928_p0 }
  0x68   : > { %p4504_p2 = pneg %p4503_p10 }
  0x6a   : > { %p4509_p4 = pnand %p4507_p3, %p4504_p2 }
  0x6c   : > { %4512 = shalt.err (!%p4509_p4)
}
  0x6d   : > { %s4513_s23 = scalar_lea.vmem %s513_s0, 128  ;;  %p4521_p13 = scmp.lt.s32.totalorder %s513_s0, %s513_s0 }
  0x6e   : > { %p4514_p7 = scmp.ne.s32.totalorder %s513_s0, %s4513_s23  ;;  %p4522_p1 = scmp.lt.s32.totalorder %s4513_s23, %s4513_s23 }
  0x70   : > { %p4516_p8 = pnand %p4514_p7, %p4928_p0  ;;  %p4523_p6 = por %p4522_p1, %p4521_p13 }
  0x72   : > { %p4517_p11 = pneg %p4516_p8 }
  0x74   : > { %p4524_p9 = pnand %p4523_p6, %p4517_p11 }
  0x76   : > { %4527 = shalt.err (!%p4524_p9)
}
  0x77   : > { %4341 = dma.hbm_to_vmem [thread:$0]  (!%p4912_p12), %s6543_s12, 128, %s513_s0, [#allocation19]  }
  0x78   : > { %s4528_s28 = scalar_lea.hbm %s6533_s2, 16 }
  0x79   : > { %p4529_p5 = scmp.ne.s32.totalorder %s6533_s2, %s4528_s28  ;;  %p4535_p3 = scmp.lt.u32.totalorder %s4528_s28, %s6533_s2 }
  0x7b   : > { %p4531_p10 = pnand %p4529_p5, %p4928_p0 }
  0x7d   : > { %p4532_p2 = pneg %p4531_p10 }
  0x7f   : > { %p4537_p4 = pnand %p4535_p3, %p4532_p2 }
  0x81   : > { %4540 = shalt.err (!%p4537_p4)
}
  0x82   : > { %s4541_s29 = scalar_lea.vmem %s423_s19, 16  ;;  %s4548_s0 = scalar_lea.vmem %s423_s19, 32 }
  0x83   : > { %p4542_p7 = scmp.ne.s32.totalorder %s423_s19, %s4541_s29  ;;  %p4549_p13 = scmp.lt.s32.totalorder %s423_s19, %s423_s19 }
  0x84   : > { %p4550_p1 = scmp.lt.s32.totalorder %s4548_s0, %s4541_s29 }
  0x85   : > { %p4544_p8 = pnand %p4542_p7, %p4928_p0 }
  0x86   : > { %p4551_p6 = por %p4550_p1, %p4549_p13 }
  0x87   : > { %p4545_p11 = pneg %p4544_p8 }
  0x89   : > { %p4552_p9 = pnand %p4551_p6, %p4545_p11 }
  0x8b   : > { %4555 = shalt.err (!%p4552_p9)
}
  0x8c   : > { %4320 = dma.hbm_to_vmem [thread:$0]  (!%p4912_p12), %s6533_s2, 16, %s423_s19, [#allocation7]  }
  0x8d   : > { %s4759_s14 = smov [#allocation11]   ;;  %s4760_s17 = smov [#allocation14]  }
  0x8e   : > { %s446_s24 = sshll.u32 %s4759_s14, 4  ;;  %s474_s28 = sshll.u32 %s4760_s17, 4  ;;  %s447_s24 = int_to_ptr.vmem [resolvable:$true] %s446_s24  ;;  %s475_s28 = int_to_ptr.vmem [resolvable:$true] %s474_s28 }
  0x8f   : > { %s4556_s20 = scalar_lea.hbm %s6535_s4, 16 }
  0x90   : > { %p4557_p5 = scmp.ne.s32.totalorder %s6535_s4, %s4556_s20  ;;  %p4563_p3 = scmp.lt.u32.totalorder %s4556_s20, %s6535_s4 }
  0x92   : > { %p4559_p10 = pnand %p4557_p5, %p4928_p0 }
  0x94   : > { %p4560_p2 = pneg %p4559_p10 }
  0x96   : > { %p4565_p4 = pnand %p4563_p3, %p4560_p2 }
  0x98   : > { %4568 = shalt.err (!%p4565_p4)
}
  0x99   : > { %s4569_s19 = scalar_lea.vmem %s447_s24, 16  ;;  %s4576_s13 = scalar_lea.vmem %s447_s24, 32 }
  0x9a   : > { %p4570_p7 = scmp.ne.s32.totalorder %s447_s24, %s4569_s19  ;;  %p4577_p13 = scmp.lt.s32.totalorder %s447_s24, %s447_s24 }
  0x9b   : > { %p4578_p1 = scmp.lt.s32.totalorder %s4576_s13, %s4569_s19 }
  0x9c   : > { %p4572_p8 = pnand %p4570_p7, %p4928_p0 }
  0x9d   : > { %p4579_p6 = por %p4578_p1, %p4577_p13 }
  0x9e   : > { %p4573_p11 = pneg %p4572_p8 }
  0xa0   : > { %p4580_p9 = pnand %p4579_p6, %p4573_p11 }
  0xa2   : > { %4583 = shalt.err (!%p4580_p9)
}
  0xa3   : > { %4326 = dma.hbm_to_vmem [thread:$0]  (!%p4912_p12), %s6535_s4, 16, %s447_s24, [#allocation10]  }
  0xa4   : > { %s4584_s20 = scalar_lea.hbm %s6539_s8, 32 }
  0xa5   : > { %p4585_p5 = scmp.ne.s32.totalorder %s6539_s8, %s4584_s20  ;;  %p4591_p3 = scmp.lt.u32.totalorder %s4584_s20, %s6539_s8 }
  0xa7   : > { %p4587_p10 = pnand %p4585_p5, %p4928_p0 }
  0xa9   : > { %p4588_p2 = pneg %p4587_p10 }
  0xab   : > { %p4593_p4 = pnand %p4591_p3, %p4588_p2 }
  0xad   : > { %4596 = shalt.err (!%p4593_p4)
}
  0xae   : > { %s4597_s19 = scalar_lea.vmem %s475_s28, 32  ;;  %p4605_p13 = scmp.lt.s32.totalorder %s475_s28, %s475_s28 }
  0xaf   : > { %p4598_p7 = scmp.ne.s32.totalorder %s475_s28, %s4597_s19  ;;  %p4606_p1 = scmp.lt.s32.totalorder %s4597_s19, %s4597_s19 }
  0xb1   : > { %p4600_p8 = pnand %p4598_p7, %p4928_p0  ;;  %p4607_p6 = por %p4606_p1, %p4605_p13 }
  0xb3   : > { %p4601_p11 = pneg %p4600_p8 }
  0xb5   : > { %p4608_p9 = pnand %p4607_p6, %p4601_p11 }
  0xb7   : > { %4611 = shalt.err (!%p4608_p9)
}
  0xb8   : > { %4332 = dma.hbm_to_vmem [thread:$0]  (!%p4912_p12), %s6539_s8, 32, %s475_s28, [#allocation13]  }
  0xb9   : > { %s4761_s14 = smov [#allocation17]   ;;  %s4762_s30 = smov [#allocation20]  }
  0xba   : > { %s498_s17 = sshll.u32 %s4761_s14, 4  ;;  %s529_s21 = sshll.u32 %s4762_s30, 4  ;;  %s499_s17 = int_to_ptr.vmem [resolvable:$true] %s498_s17  ;;  %s530_s21 = int_to_ptr.vmem [resolvable:$true] %s529_s21 }
  0xbb   : > { %s4612_s29 = scalar_lea.hbm %s6542_s11, 256 }
  0xbc   : > { %p4613_p5 = scmp.ne.s32.totalorder %s6542_s11, %s4612_s29  ;;  %p4619_p3 = scmp.lt.u32.totalorder %s4612_s29, %s6542_s11 }
  0xbe   : > { %p4615_p10 = pnand %p4613_p5, %p4928_p0 }
  0xc0   : > { %p4616_p2 = pneg %p4615_p10 }
  0xc2   : > { %p4621_p4 = pnand %p4619_p3, %p4616_p2 }
  0xc4   : > { %4624 = shalt.err (!%p4621_p4)
}
  0xc5   : > { %s4625_s28 = scalar_lea.vmem %s499_s17, 256  ;;  %p4633_p13 = scmp.lt.s32.totalorder %s499_s17, %s499_s17 }
  0xc6   : > { %p4626_p7 = scmp.ne.s32.totalorder %s499_s17, %s4625_s28  ;;  %p4634_p1 = scmp.lt.s32.totalorder %s4625_s28, %s4625_s28 }
  0xc8   : > { %p4628_p8 = pnand %p4626_p7, %p4928_p0  ;;  %p4635_p6 = por %p4634_p1, %p4633_p13 }
  0xca   : > { %p4629_p11 = pneg %p4628_p8 }
  0xcc   : > { %p4636_p9 = pnand %p4635_p6, %p4629_p11 }
  0xce   : > { %4639 = shalt.err (!%p4636_p9)
}
  0xcf   : > { %s6580_s13 = smov 128   ;;  %s4640_s29 = scalar_lea.hbm %s6546_s15, 16 }
  0xd0   : > { %4338 = dma.hbm_to_vmem [thread:$0]  (!%p4912_p12), %s6542_s11, 256, %s499_s17, [#allocation16], %s6580_s13, %s6580_s13, %s4756_s27  }
  0xd1   : > { %p4641_p5 = scmp.ne.s32.totalorder %s6546_s15, %s4640_s29  ;;  %p4647_p3 = scmp.lt.u32.totalorder %s4640_s29, %s6546_s15 }
  0xd3   : > { %p4643_p10 = pnand %p4641_p5, %p4928_p0 }
  0xd5   : > { %p4644_p2 = pneg %p4643_p10 }
  0xd7   : > { %p4649_p4 = pnand %p4647_p3, %p4644_p2 }
  0xd9   : > { %4652 = shalt.err (!%p4649_p4)
}
  0xda   : > { %s4653_s28 = scalar_lea.vmem %s530_s21, 16  ;;  %s4660_s27 = scalar_lea.vmem %s530_s21, 32 }
  0xdb   : > { %p4654_p7 = scmp.ne.s32.totalorder %s530_s21, %s4653_s28  ;;  %p4661_p13 = scmp.lt.s32.totalorder %s530_s21, %s530_s21 }
  0xdc   : > { %p4662_p1 = scmp.lt.s32.totalorder %s4660_s27, %s4653_s28 }
  0xdd   : > { %p4656_p8 = pnand %p4654_p7, %p4928_p0 }
  0xde   : > { %p4663_p6 = por %p4662_p1, %p4661_p13 }
  0xdf   : > { %p4657_p11 = pneg %p4656_p8 }
  0xe1   : > { %p4664_p9 = pnand %p4663_p6, %p4657_p11 }
  0xe3   : > { %4667 = shalt.err (!%p4664_p9)
}
  0xe4   : > { %4344 = dma.hbm_to_vmem [thread:$0]  (!%p4912_p12), %s6546_s15, 16, %s530_s21, [#allocation19]  }
  0xe5   : > { %p6581_p5 = scmp.ne.s32.totalorder %s6577_s18, 0 }
  0xe6   : > { %p6582_p10 = scmp.eq.s32.totalorder (!%p6581_p5), %s4874_s25, 0 }
  0xe7   : > { %550 = sbr.rel (%p6581_p5) target bundleno = 2607 (0xa2f), region = 84 }
  0xee   : > { %4713 = dma.done.wait (%p6582_p10), [#allocation7], 16   ;;  %p6583_p0 = pmov %p6582_p10 }
  0xf0   : > { %4715 = vsyncadd (%p6583_p0), [#allocation7], 4294967280  ;;  %p6584_p2 = pmov %p6583_p0 }
  0xf1   : > { %p6585_p3 = pmov %p6583_p0 }
  0xf2   : > { %4717 = dma.done.wait (%p6584_p2), [#allocation10], 2576  }
  0xf3   : > { %4719 = vsyncadd (%p6585_p3), [#allocation10], 4294964720  ;;  %p6586_p4 = pmov %p6583_p0 }
  0xf4   : > { %p6587_p12 = pmov %p6583_p0 }
  0xf5   : > { %4721 = dma.done.wait (%p6586_p4), [#allocation13], 48  }
  0xf6   : > { %4723 = vsyncadd (%p6587_p12), [#allocation13], 4294967248  ;;  %p6588_p7 = pmov %p6583_p0 }
  0xf7   : > { %p6589_p8 = pmov %p6583_p0 }
  0xf8   : > { %4725 = dma.done.wait (%p6588_p7), [#allocation16], 288  }
  0xf9   : > { %4727 = vsyncadd (%p6589_p8), [#allocation16], 4294967008  ;;  %p6590_p11 = pmov %p6583_p0 }
  0xfa   : > { %p6591_p13 = pmov %p6583_p0 }
  0xfb   : > { %4729 = dma.done.wait (%p6590_p11), [#allocation19], 144  }
  0xfc   : > { %4731 = vsyncadd (%p6591_p13), [#allocation19], 4294967152  ;;  %v4763_v0 = vmov 0.0|0.0   ;;  %p631_p1 = scmp.lt.s32.totalorder %s4874_s25, 1  ;;  %vm4764_vm0 = vmmov 0   ;;  %v4765_v1 = vmov 0.0  }
  0xfd   : > { %3757 = vmatprep.subr.bf16.mxu0 %v4763_v0  ;;  %4231 = vmatprep.subr.bf16.mxu1 %v4763_v0  ;;  %1719 = vst [vmem:[#allocation4] sm:$0xff] %v4765_v1  ;;  %2053 = vst [vmem:[#allocation5] sm:$0xff] %v4765_v1  ;;  %vm658_vm1 = vcmask 1046528   ;;  %v639_v2 = vld [vmem:[%s6532_s1] sm:$0xff]  ;;  %v640_v3 = vld [vmem:[%s6532_s1 + $0x8] sm:$0x7f] }
  0xfe   : > { %3590 = vmatprep.mubr.msk.f32.mxu0 %vm4764_vm0, %v4765_v1  ;;  %2054 = vst [vmem:[#allocation5 + $0x8] sm:$0xff] %v4765_v1  ;;  %3596 = vmatprep.mubr.msk.f32.mxu1 %vm4764_vm0, %v4765_v1  ;;  %s632_s16 = scalar_select %p631_p1, %s4874_s25, 1  ;;  %vm4766_vm2 = vmmov 1   ;;  %v3758_v4 = vpack.c.bf16 %v640_v3, %v639_v2  ;;  %vm648_vm4 = vcmask 121856   ;;  %vm745_vm5 = vcmask 261120   ;;  %v757_v8 = vld [vmem:[#allocation9] sm:$0xff] }
  0xff   : > { %vm3759_vm3 = vmpackc.low %vm658_vm1, %vm4766_vm2  ;;  %s6592_s29 = sld [smem:[#allocation36_spill]]  ;;  %v758_v9 = vld [vmem:[#allocation9 + $0x8] sm:$0xff]  ;;  %746 = vst.msk [vmem:[#allocation2] sm:$0xff] %vm745_vm5, %v4765_v1  ;;  %vm748_vm6 = vcmask 259072   ;;  %v759_v11 = vld [vmem:[#allocation9 + $0x10] sm:$0xff]  ;;  %vm752_vm7 = vcmask 254976  }
 0x100   : > { %s4278_s18 = smul.u32 24, %s632_s16  ;;  %3760 = vmatpush3.bf16.msk.msra.mxu0 %vm3759_vm3, %v3758_v4  ;;  %4232 = vmatpush3.bf16.msk.msra.mxu1 %vm3759_vm3, %v3758_v4  ;;  %747 = vst.msk [vmem:[#allocation2 + $0x8] sm:$0xff] %vm745_vm5, %v4765_v1  ;;  %v3762_v10 = vpack.c.bf16 %v758_v9, %v757_v8  ;;  %v760_v12 = vld [vmem:[#allocation9 + $0x18] sm:$0xff]  ;;  %v861_v27 = vld [vmem:[#allocation9 + $0x20] sm:$0xff]  ;;  %v862_v28 = vld [vmem:[#allocation9 + $0x28] sm:$0xff]  ;;  %vm1259_vm8 = vcmask 146432  }
 0x101   : > { %3761 = vmatprep.subr.bf16.mxu1 %v4763_v0  ;;  %749 = vst.msk [vmem:[#allocation2 + $0x10] sm:$0x3f] %vm748_vm6, %v4765_v1  ;;  %v3765_v13 = vpack.c.bf16 %v760_v12, %v759_v11  ;;  %v3092_v14 = vld [vmem:[#allocation6] ss:$0 sm:$0xff]  ;;  %v3768_v29 = vpack.c.bf16 %v862_v28, %v861_v27  ;;  %v863_v30 = vld [vmem:[#allocation9 + $0x30] sm:$0xff]  ;;  %v961_v35 = vld [vmem:[#allocation9 + $0x40] sm:$0xff] }
 0x102   : > { %v864_v31 = vld [vmem:[#allocation9 + $0x38] sm:$0xff]  ;;  %v962_v36 = vld [vmem:[#allocation9 + $0x48] sm:$0xff]  ;;  %v963_v39 = vld [vmem:[#allocation9 + $0x50] sm:$0xff]  ;;  %vm1266_vm9 = vcmask 1041408   ;;  %vm1349_vm10 = vcmask 519168   ;;  %vm1347_vm11 = vcmask 523264  }
 0x103   : > { %v3771_v33 = vpack.c.bf16 %v864_v31, %v863_v30  ;;  %v3774_v38 = vpack.c.bf16 %v962_v36, %v961_v35  ;;  %v964_v40 = vld [vmem:[#allocation9 + $0x58] sm:$0xff]  ;;  %v1061_v44 = vld [vmem:[#allocation9 + $0x60] sm:$0xff]  ;;  %v1062_v45 = vld [vmem:[#allocation9 + $0x68] sm:$0xff]  ;;  %1350 = vst.msk [vmem:[#allocation3 + $0x8] sm:$0xf] %vm1349_vm10, %v4765_v1  ;;  %vm1352_vm12 = vcmask 517120  }
 0x104   : > { %v3777_v42 = vpack.c.bf16 %v964_v40, %v963_v39  ;;  %v3780_v47 = vpack.c.bf16 %v1062_v45, %v1061_v44  ;;  %v1063_v48 = vld [vmem:[#allocation9 + $0x70] sm:$0xff]  ;;  %v1064_v49 = vld [vmem:[#allocation9 + $0x78] sm:$0xff]  ;;  %v1161_v53 = vld [vmem:[#allocation9 + $0x80] sm:$0xff]  ;;  %1348 = vst.msk [vmem:[#allocation3] sm:$0xff] %vm1347_vm11, %v4765_v1  ;;  %vm1641_vm14 = vcmask 80896   ;;  %s6593_s22 = sld [smem:[#allocation38_spill]] }
 0x105   : > { %s635_s0 = scalar_lea.vmem %s6592_s29, %s4278_s18  ;;  %v3783_v51 = vpack.c.bf16 %v1064_v49, %v1063_v48  ;;  %v1162_v54 = vld [vmem:[#allocation9 + $0x88] sm:$0xff]  ;;  %v1163_v57 = vld [vmem:[#allocation9 + $0x90] sm:$0xff]  ;;  %v1164_v58 = vld [vmem:[#allocation9 + $0x98] sm:$0xff]  ;;  %vm2509_vm15 = vcmask 1045504   ;;  %s6595_s14 = sld [smem:[#allocation37_spill]]  ;;  %vm2911_vm1 = vcmask 24576  }
 0x106   : > { %v636_v5 = vld [vmem:[%s635_s0] sm:$0xff]  ;;  %v638_v6 = vld [vmem:[%s635_s0 + $0x10] sm:$0x3]  ;;  %v637_v7 = vld [vmem:[%s635_s0 + $0x8] sm:$0xff]  ;;  %v3786_v56 = vpack.c.bf16 %v1162_v54, %v1161_v53  ;;  %v3789_v60 = vpack.c.bf16 %v1164_v58, %v1163_v57  ;;  %s6596_s23 = sld [smem:[#allocation29_spill]]  ;;  %s6597_s19 = sld [smem:[#allocation34_spill]] }
 0x107   : > { %3591 = vmatmul.mubr.msk.f32.vlgmr.msra.gmra.mrb[0].mxu0 %vm648_vm4, %v636_v5  ;;  %3597 = vmatmul.mubr.msk.f32.vlgmr.msra.gmra.mrb[0].mxu1 %vm648_vm4, %v638_v6  ;;  %v1257_v4 = vld [vmem:[#allocation17] sm:$0xff]  ;;  %v1363_v27 = vld [vmem:[%s6536_s5 + $0x38] sm:$0xff]  ;;  %v3129_v48 = vld [vmem:[%s6536_s5 + $0x80] sm:$0xff]  ;;  %s3400_s28 = sshll.u32 %s4874_s25, 4  ;;  %s6598_s18 = sld [smem:[#allocation39_spill]] }
 0x108   : > { %3593 = vmatprep.mubr.msk.f32.mxu0 %vm4764_vm0, %v4765_v1  ;;  %3607 = vmatprep.mubr.msk.f32.mxu1 %vm4764_vm0, %v4765_v1  ;;  %v1159_v3 = vld [vmem:[#allocation2 + $0x14] sm:$0x3]  ;;  %v3120_v30 = vld [vmem:[%s6536_s5 + $0x48] sm:$0xff]  ;;  %vm3845_vm13 = vmpackc.low %vm1266_vm9, %vm4766_vm2  ;;  %s4767_s25 = smov [#allocation21]  }
 0x109   : > { %3763 = vmatpush3.bf16.msra.mxu1 %v3762_v10  ;;  %v3121_v36 = vld [vmem:[%s6536_s5 + $0x50] sm:$0xff]  ;;  %v3130_v49 = vld [vmem:[%s6536_s5 + $0x88] sm:$0xff]  ;;  %s4672_s30 = sshll.u32 %s4767_s25, 4  ;;  %s4673_s30 = int_to_ptr.vmem [resolvable:$false] %s4672_s30 }
 0x10a   : > { %3764 = vmatprep.subr.bf16.mxu1 %v4763_v0  ;;  %v3125_v45 = vld [vmem:[%s6536_s5 + $0x70] sm:$0xff]  ;;  %s6594_s29 = smov %s6593_s22  ;;  %s4674_s20 = scalar_lea.vmem %s4673_s30, 32 }
 0x10b   : > { %3594 = vmatmul.mubr.msk.f32.gmra.mrb[2].mxu0 %vm648_vm4, %v637_v7  ;;  %v3097_v7 = vld [vmem:[#allocation11] ss:$0 sm:$0xff] }
 0x10c   : > { %3690 = vmatprep.mubr.msk.f32.mxu0 %vm1259_vm8, %v1257_v4  ;;  %s629_s24 = sand.u32 1, %s6596_s23   ;;  %p6599_p9 = scmp.ne.s32.totalorder %s6597_s19, 0 }
 0x10d   : > { %3766 = vmatpush3.bf16.msra.mxu1 %v3765_v13  ;;  %s630_s27 = scalar_lea.vmem [#allocation21], %s629_s24  ;;  %s6489_s26 = scalar_lea.hbm %s6598_s18, %s3400_s28 }
 0x10e   : > { %3767 = vmatprep.subr.bf16.mxu1 %v4763_v0  ;;  %s2926_s17 = sshll.u32 %s630_s27, 4  ;;  %s2914_s21 = scalar_lea.sflag [#allocation8], %s629_s24  ;;  %s6491_s17 = int_to_ptr.vmem [resolvable:$true] %s2926_s17 }
 0x10f   : > { %p4675_p0 = scmp.lt.s32.totalorder %s6491_s17, %s4673_s30 }
 0x1da   : > { %v728_v15 = vpop.f32.mrb[0].mxu0  ;;  %v738_v16 = vpop.f32.mrb[0].mxu1 }
 0x1db   : > { %v729_v17 = vadd.f32 %v3092_v14, %v728_v15  ;;  %v3592_v18 = vpop.f32.mrb[1].mxu0  ;;  %v739_v19 = vadd.f32 %v3092_v14, %v738_v16  ;;  %v3598_v20 = vpop.f32.mrb[1].mxu1  ;;  %v1357_v15 = vld [vmem:[%s6536_s5 + $0x8] sm:$0xff] }
 0x1dc   : > { %v1358_v20 = vld [vmem:[%s6536_s5 + $0x10] sm:$0xff] }
 0x1dd   : > { %v742_v21 = vmax.f32 %v729_v17, 0.0  ;;  %v744_v22 = vmax.f32 %v739_v19, 0.0  ;;  %v1258_v19 = vld [vmem:[#allocation17 + $0x8] sm:$0x3] }
 0x1de   : > { %v733_v23 = vpop.f32.mrb[2].mxu0 }
 0x1df   : > { %750 = vst.msk [vmem:[#allocation2 + $0x2] sm:$0xff] %vm745_vm5, %v742_v21  ;;  %v734_v24 = vadd.f32 %v3092_v14, %v733_v23  ;;  %v3595_v25 = vpop.f32.mrb[3].mxu0  ;;  %v1356_v14 = vld [vmem:[%s6536_s5] sm:$0xff]  ;;  %v1359_v21 = vld [vmem:[%s6536_s5 + $0x18] sm:$0xff] }
 0x1e0   : > { %753 = vst.msk [vmem:[#allocation2 + $0x12] sm:$0x3] %vm752_vm7, %v744_v22  ;;  %v3795_v18 = vpack.c.bf16 %v1357_v15, %v1356_v14  ;;  %v3799_v22 = vpack.c.bf16 %v1359_v21, %v1358_v20  ;;  %v1360_v23 = vld [vmem:[%s6536_s5 + $0x20] sm:$0xff] }
 0x1e1   : > { %v743_v26 = vmax.f32 %v734_v24, 0.0  ;;  %v1361_v24 = vld [vmem:[%s6536_s5 + $0x28] sm:$0xff]  ;;  %v1730_v15 = vld [vmem:[%s6538_s7 + $0x40] sm:$0xff] }
 0x1e2   : > { %v3803_v25 = vpack.c.bf16 %v1361_v24, %v1360_v23  ;;  %v1734_v21 = vld [vmem:[%s6538_s7 + $0x60] sm:$0xff]  ;;  %v1739_v23 = vld [vmem:[%s6538_s7 + $0x88] sm:$0xff]  ;;  %v1741_v24 = vld [vmem:[%s6538_s7 + $0x98] sm:$0xff] }
 0x1e3   : > { %751 = vst.msk [vmem:[#allocation2 + $0xa] sm:$0xff] %vm745_vm5, %v743_v26  ;;  %v1362_v26 = vld [vmem:[%s6536_s5 + $0x30] sm:$0xff] }
 0x1e4   : > { %v3807_v28 = vpack.c.bf16 %v1363_v27, %v1362_v26  ;;  %v3863_v26 = vpack.c.bf16 %v1741_v24, %v1739_v23  ;;  %v1738_v27 = vld [vmem:[%s6538_s7 + $0x80] sm:$0xff]  ;;  %v2083_v23 = vld [vmem:[%s6540_s9 + $0x90] sm:$0xff]  ;;  %v2086_v24 = vld [vmem:[%s6540_s9 + $0xa8] sm:$0xff] }
 0x1e6   : > { %v754_v32 = vld [vmem:[#allocation2] sm:$0xff] }
 0x1e7   : > { %3608 = vmatmul.mubr.msk.f32.vlgmr.msra.gmra.mrb[2].mxu1 %vm745_vm5, %v754_v32  ;;  %v857_v41 = vld [vmem:[#allocation2 + $0x1] sm:$0xff]  ;;  %v959_v55 = vld [vmem:[#allocation2 + $0x12] sm:$0x3] }
 0x1e8   : > { %3610 = vmatprep.mubr.msk.f32.mxu1 %vm4764_vm0, %v4765_v1  ;;  %3769 = vmatpush3.bf16.msra.mxu1 %v3768_v29  ;;  %v957_v50 = vld [vmem:[#allocation2 + $0x2] sm:$0xff]  ;;  %v1059_v62 = vld [vmem:[#allocation2 + $0x13] sm:$0x3] }
 0x1e9   : > { %3770 = vmatprep.subr.bf16.mxu1 %v4763_v0  ;;  %v3119_v29 = vld [vmem:[%s6536_s5 + $0x40] sm:$0xff] }
 0x1ea   : > { %v755_v34 = vld [vmem:[#allocation2 + $0x8] sm:$0xff]  ;;  %v756_v37 = vld [vmem:[#allocation2 + $0x10] sm:$0x3]  ;;  %v3811_v31 = vpack.c.bf16 %v3120_v30, %v3119_v29  ;;  %v1745_v30 = vld [vmem:[%s6538_s7 + $0xb8] sm:$0xff] }
 0x1eb   : > { %3611 = vmatmul.mubr.msk.f32.gmra.mrb[4].mxu1 %vm745_vm5, %v755_v34  ;;  %v858_v43 = vld [vmem:[#allocation2 + $0x9] sm:$0xff]  ;;  %v859_v46 = vld [vmem:[#allocation2 + $0x11] sm:$0x3] }
 0x1ec   : > { %3613 = vmatprep.mubr.msk.f32.mxu1 %vm4764_vm0, %v4765_v1  ;;  %3772 = vmatpush3.bf16.msra.mxu1 %v3771_v33  ;;  %v958_v52 = vld [vmem:[#allocation2 + $0xa] sm:$0xff] }
 0x1ed   : > { %3773 = vmatprep.subr.bf16.mxu1 %v4763_v0  ;;  %v1057_v59 = vld [vmem:[#allocation2 + $0x3] sm:$0xff]  ;;  %v1058_v61 = vld [vmem:[#allocation2 + $0xb] sm:$0xff] }
 0x1ee   : > { %v1157_v63 = vld [vmem:[#allocation2 + $0x4] sm:$0xff]  ;;  %v1158_v2 = vld [vmem:[#allocation2 + $0xc] sm:$0xff] }
 0x1ef   : > { %3614 = vmatmul.mubr.msk.f32.gmra.mrb[6].mxu1 %vm745_vm5, %v756_v37  ;;  %v3122_v37 = vld [vmem:[%s6536_s5 + $0x58] sm:$0xff]  ;;  %v1743_v29 = vld [vmem:[%s6538_s7 + $0xa8] sm:$0xff] }
 0x1f0   : > { %3624 = vmatprep.mubr.msk.f32.mxu1 %vm4764_vm0, %v4765_v1  ;;  %v3815_v40 = vpack.c.bf16 %v3122_v37, %v3121_v36  ;;  %v3116_v36 = vld [vmem:[#allocation12] ss:$0 sm:$0xff] }
 0x1f3   : > { %3625 = vmatmul.mubr.msk.f32.vlgmr.msra.gmra.mrb[2].mxu1 %vm745_vm5, %v857_v41  ;;  %v3123_v41 = vld [vmem:[%s6536_s5 + $0x60] sm:$0xff] }
 0x1f4   : > { %3627 = vmatprep.mubr.msk.f32.mxu1 %vm4764_vm0, %v4765_v1  ;;  %3775 = vmatpush3.bf16.msra.mxu1 %v3774_v38 }
 0x1f5   : > { %3776 = vmatprep.subr.bf16.mxu1 %v4763_v0 }
 0x1f7   : > { %3628 = vmatmul.mubr.msk.f32.gmra.mrb[4].mxu1 %vm745_vm5, %v858_v43 }
 0x1f8   : > { %3630 = vmatprep.mubr.msk.f32.mxu1 %vm4764_vm0, %v4765_v1  ;;  %3778 = vmatpush3.bf16.msra.mxu1 %v3777_v42  ;;  %v3124_v42 = vld [vmem:[%s6536_s5 + $0x68] sm:$0xff] }
 0x1f9   : > { %3779 = vmatprep.subr.bf16.mxu1 %v4763_v0  ;;  %v3819_v44 = vpack.c.bf16 %v3124_v42, %v3123_v41  ;;  %v1640_v42 = vld [vmem:[#allocation18] sm:$0x3f] }
 0x1fb   : > { %3631 = vmatmul.mubr.msk.f32.gmra.mrb[6].mxu1 %vm745_vm5, %v859_v46  ;;  %v3126_v46 = vld [vmem:[%s6536_s5 + $0x78] sm:$0xff] }
 0x1fc   : > { %3641 = vmatprep.mubr.msk.f32.mxu1 %vm4764_vm0, %v4765_v1 }
 0x1ff   : > { %3642 = vmatmul.mubr.msk.f32.vlgmr.msra.gmra.mrb[2].mxu1 %vm745_vm5, %v957_v50  ;;  %v3827_v50 = vpack.c.bf16 %v3130_v49, %v3129_v48  ;;  %v1751_v49 = vld [vmem:[%s6538_s7 + $0xe8] sm:$0xff] }
 0x200   : > { %3644 = vmatprep.mubr.msk.f32.mxu1 %vm4764_vm0, %v4765_v1  ;;  %3781 = vmatpush3.bf16.msra.mxu1 %v3780_v47  ;;  %v3823_v47 = vpack.c.bf16 %v3126_v46, %v3125_v45  ;;  %v1746_v46 = vld [vmem:[%s6538_s7 + $0xc0] sm:$0xff] }
 0x201   : > { %3782 = vmatprep.subr.bf16.mxu1 %v4763_v0 }
 0x203   : > { %3645 = vmatmul.mubr.msk.f32.gmra.mrb[4].mxu1 %vm745_vm5, %v958_v52  ;;  %v3132_v52 = vld [vmem:[%s6536_s5 + $0x98] sm:$0xff] }
 0x204   : > { %3647 = vmatprep.mubr.msk.f32.mxu1 %vm4764_vm0, %v4765_v1  ;;  %3784 = vmatpush3.bf16.msra.mxu1 %v3783_v51  ;;  %v3131_v51 = vld [vmem:[%s6536_s5 + $0x90] sm:$0xff] }
 0x205   : > { %3785 = vmatprep.subr.bf16.mxu1 %v4763_v0  ;;  %v3831_v53 = vpack.c.bf16 %v3132_v52, %v3131_v51  ;;  %v1750_v51 = vld [vmem:[%s6538_s7 + $0xe0] sm:$0xff] }
 0x207   : > { %3648 = vmatmul.mubr.msk.f32.gmra.mrb[6].mxu1 %vm745_vm5, %v959_v55  ;;  %v3133_v55 = vld [vmem:[%s6536_s5 + $0xa0] sm:$0xff] }
 0x208   : > { %3658 = vmatprep.mubr.msk.f32.mxu1 %vm4764_vm0, %v4765_v1 }
 0x20b   : > { %3659 = vmatmul.mubr.msk.f32.vlgmr.msra.gmra.mrb[2].mxu1 %vm745_vm5, %v1057_v59  ;;  %v3135_v59 = vld [vmem:[%s6536_s5 + $0xb0] sm:$0xff] }
 0x20c   : > { %3661 = vmatprep.mubr.msk.f32.mxu1 %vm4764_vm0, %v4765_v1  ;;  %3787 = vmatpush3.bf16.msra.mxu1 %v3786_v56  ;;  %v3134_v56 = vld [vmem:[%s6536_s5 + $0xa8] sm:$0xff] }
 0x20d   : > { %3788 = vmatprep.subr.bf16.mxu1 %v4763_v0  ;;  %v3835_v58 = vpack.c.bf16 %v3134_v56, %v3133_v55  ;;  %v3144_v55 = vld [vmem:[%s6538_s7 + $0x118] sm:$0xff] }
 0x20f   : > { %3662 = vmatmul.mubr.msk.f32.gmra.mrb[4].mxu1 %vm745_vm5, %v1058_v61 }
 0x210   : > { %3664 = vmatprep.mubr.msk.f32.mxu1 %vm4764_vm0, %v4765_v1  ;;  %3790 = vmatpush3.bf16.msra.mxu1 %v3789_v60  ;;  %v3136_v60 = vld [vmem:[%s6536_s5 + $0xb8] sm:$0xff] }
 0x211   : > { %v3839_v61 = vpack.c.bf16 %v3136_v60, %v3135_v59  ;;  %v2068_v59 = vld [vmem:[%s6540_s9 + $0x18] sm:$0xff]  ;;  %v2065_v60 = vld [vmem:[%s6540_s9] sm:$0xff] }
 0x213   : > { %3665 = vmatmul.mubr.msk.f32.gmra.mrb[6].mxu1 %vm745_vm5, %v1059_v62 }
 0x214   : > { %3675 = vmatprep.mubr.msk.f32.mxu1 %vm4764_vm0, %v4765_v1 }
 0x217   : > { %3676 = vmatmul.mubr.msk.f32.vlgmr.msra.gmra.mrb[2].mxu1 %vm745_vm5, %v1157_v63  ;;  %v1723_v63 = vld [vmem:[%s6538_s7 + $0x8] sm:$0xff] }
 0x218   : > { %3678 = vmatprep.mubr.msk.f32.mxu1 %vm4764_vm0, %v4765_v1 }
 0x21b   : > { %3679 = vmatmul.mubr.msk.f32.gmra.mrb[4].mxu1 %vm745_vm5, %v1158_v2  ;;  %v1725_v2 = vld [vmem:[%s6538_s7 + $0x18] sm:$0xff] }
 0x21c   : > { %3681 = vmatprep.mubr.msk.f32.mxu1 %vm4764_vm0, %v4765_v1  ;;  %v3847_v4 = vpack.c.bf16 %v1725_v2, %v1723_v63  ;;  %v2070_v63 = vld [vmem:[%s6540_s9 + $0x28] sm:$0xff]  ;;  %v2072_v2 = vld [vmem:[%s6540_s9 + $0x38] sm:$0xff] }
 0x21e   : > { %3848 = vmatprep.subr.bf16.mxu1 %v3847_v4  ;;  %v3947_v4 = vpack.c.bf16 %v2072_v2, %v2070_v63  ;;  %v2109_v2 = vld [vmem:[%s6540_s9 + $0x160] sm:$0xff] }
 0x21f   : > { %3682 = vmatmul.mubr.msk.f32.gmra.mrb[6].mxu1 %vm745_vm5, %v1159_v3  ;;  %v1722_v3 = vld [vmem:[%s6538_s7] sm:$0xff] }
 0x220   : > { %1830 = vmatprep.mubr.f32.mxu1 %v4765_v1 }
 0x2ea   : > { %v1240_v5 = vpop.f32.mrb[2].mxu1 }
 0x2eb   : > { %v3677_v6 = vpop.f32.mrb[3].mxu1  ;;  %v4233_v9 = vadd.f32 %v3097_v7, %v1240_v5  ;;  %v1727_v5 = vld [vmem:[%s6538_s7 + $0x28] sm:$0xff] }
 0x2ec   : > { %v1729_v6 = vld [vmem:[%s6538_s7 + $0x38] sm:$0xff] }
 0x2ee   : > { %v1245_v8 = vpop.f32.mrb[4].mxu1 }
 0x2ef   : > { %v4234_v10 = vadd.f32 %v3097_v7, %v1245_v8  ;;  %v3680_v11 = vpop.f32.mrb[5].mxu1  ;;  %v3851_v8 = vpack.c.bf16 %v1729_v6, %v1727_v5  ;;  %v2071_v5 = vld [vmem:[%s6540_s9 + $0x30] sm:$0xff]  ;;  %v2074_v6 = vld [vmem:[%s6540_s9 + $0x48] sm:$0xff] }
 0x2f0   : > { %v1731_v11 = vld [vmem:[%s6538_s7 + $0x48] sm:$0xff] }
 0x2f1   : > { %v3791_v12 = vpack.c.bf16 %v4234_v10, %v4233_v9  ;;  %v1726_v9 = vld [vmem:[%s6538_s7 + $0x20] sm:$0xff]  ;;  %v1728_v10 = vld [vmem:[%s6538_s7 + $0x30] sm:$0xff] }
 0x2f2   : > { %v1250_v13 = vpop.f32.mrb[6].mxu1 }
 0x2f3   : > { %v4235_v16 = vadd.f32 %v3097_v7, %v1250_v13  ;;  %v3683_v17 = vpop.f32.mrb[7].mxu1  ;;  %3792 = vmatprep.subr.bf16.mxu0 %v3791_v12  ;;  %v3853_v13 = vpack.c.bf16 %v1728_v10, %v1726_v9  ;;  %v2073_v10 = vld [vmem:[%s6540_s9 + $0x40] sm:$0xff] }
 0x2f4   : > { %3794 = vmatpush3.bf16.msra.mxu0 %v3791_v12  ;;  %v1733_v12 = vld [vmem:[%s6538_s7 + $0x58] sm:$0xff]  ;;  %v1735_v17 = vld [vmem:[%s6538_s7 + $0x68] sm:$0xff] }
 0x2f5   : > { %3688 = vmatprep.subr.msk.mxu0 %vm1266_vm9, %v4235_v16  ;;  %v3855_v14 = vpack.c.bf16 %v1733_v12, %v1731_v11  ;;  %v2075_v11 = vld [vmem:[%s6540_s9 + $0x50] sm:$0xff]  ;;  %v2078_v12 = vld [vmem:[%s6540_s9 + $0x68] sm:$0xff] }
 0x2f8   : > { %3689 = vmatpush3.msk.msra.mxu0 %vm1266_vm9, %v4235_v16  ;;  %v1732_v16 = vld [vmem:[%s6538_s7 + $0x50] sm:$0xff] }
 0x2f9   : > { %3691 = vmatmul.mubr.msk.f32.vlgmr.msra.gmra.mrb[4].mxu0 %vm1259_vm8, %v1258_v19  ;;  %3796 = vmatprep.subr.bf16.mxu0 %v3795_v18  ;;  %v3857_v19 = vpack.c.bf16 %v1732_v16, %v1730_v15  ;;  %v2077_v16 = vld [vmem:[%s6540_s9 + $0x60] sm:$0xff] }
 0x2fa   : > { %3798 = vmatpush3.bf16.msra.mxu0 %v3795_v18  ;;  %v1737_v18 = vld [vmem:[%s6538_s7 + $0x78] sm:$0xff] }
 0x2fb   : > { %3800 = vmatprep.subr.bf16.mxu0 %v3799_v22  ;;  %v3859_v20 = vpack.c.bf16 %v1737_v18, %v1735_v17  ;;  %v2079_v17 = vld [vmem:[%s6540_s9 + $0x70] sm:$0xff]  ;;  %v2082_v18 = vld [vmem:[%s6540_s9 + $0x88] sm:$0xff] }
 0x2fe   : > { %3802 = vmatpush3.bf16.msra.mxu0 %v3799_v22  ;;  %v1736_v22 = vld [vmem:[%s6538_s7 + $0x70] sm:$0xff] }
 0x2ff   : > { %3804 = vmatprep.subr.bf16.mxu0 %v3803_v25 }
 0x302   : > { %3806 = vmatpush3.bf16.msra.mxu0 %v3803_v25  ;;  %v3861_v25 = vpack.c.bf16 %v1736_v22, %v1734_v21  ;;  %v2081_v22 = vld [vmem:[%s6540_s9 + $0x80] sm:$0xff] }
 0x303   : > { %3808 = vmatprep.subr.bf16.mxu0 %v3807_v28 }
 0x306   : > { %3810 = vmatpush3.bf16.msra.mxu0 %v3807_v28  ;;  %v1740_v28 = vld [vmem:[%s6538_s7 + $0x90] sm:$0xff] }
 0x307   : > { %3812 = vmatprep.subr.bf16.mxu0 %v3811_v31 }
 0x3cc   : > { %v3692_v32 = vpop.f32.mrb[4].mxu0 }
 0x3cd   : > { %v1346_v33 = vmax.f32 %v3692_v32, 0.0  ;;  %v1336_v34 = vpop.f32.mrb[5].mxu0  ;;  %v3867_v32 = vpack.c.bf16 %v1745_v30, %v1743_v29  ;;  %v2087_v29 = vld [vmem:[%s6540_s9 + $0xb0] sm:$0xff]  ;;  %v2090_v30 = vld [vmem:[%s6540_s9 + $0xc8] sm:$0xff] }
 0x3ce   : > { %v1345_v35 = vmax.f32 %v1336_v34, 0.0  ;;  %v1744_v34 = vld [vmem:[%s6538_s7 + $0xb0] sm:$0xff] }
 0x3cf   : > { %1353 = vst.msk [vmem:[#allocation3 + $0x9] sm:$0x3] %vm1352_vm12, %v1346_v33  ;;  %v1742_v33 = vld [vmem:[%s6538_s7 + $0xa0] sm:$0xff] }
 0x3d0   : > { %1351 = vst.msk [vmem:[#allocation3 + $0x1] sm:$0xff] %vm1347_vm11, %v1345_v35  ;;  %v3869_v35 = vpack.c.bf16 %v1744_v34, %v1742_v33  ;;  %v2089_v34 = vld [vmem:[%s6540_s9 + $0xc0] sm:$0xff] }
 0x3d6   : > { %v1453_v54 = vld [vmem:[#allocation3 + $0x9] sm:$0x3] }
 0x3d7   : > { %v1354_v38 = vld [vmem:[#allocation3] sm:$0xff]  ;;  %v1355_v39 = vld [vmem:[#allocation3 + $0x8] sm:$0x3]  ;;  %v1547_v62 = vld [vmem:[#allocation3 + $0xa] sm:$0x3] }
 0x3d8   : > { %3709 = vmatprep.mubr.msk.f32.mxu0 %vm1347_vm11, %v1354_v38  ;;  %v1452_v43 = vld [vmem:[#allocation3 + $0x1] sm:$0xff] }
 0x3d9   : > { %3710 = vmatmul.mubr.msk.f32.vlgmr.msra.gmra.mrb[6].mxu0 %vm1347_vm11, %v1355_v39  ;;  %v1546_v57 = vld [vmem:[#allocation3 + $0x2] sm:$0xff] }
 0x3da   : > { %3814 = vmatpush3.bf16.msra.mxu0 %v3811_v31  ;;  %3728 = vmatprep.mubr.msk.f32.mxu0 %vm1347_vm11, %v1452_v43  ;;  %v3865_v31 = vpack.c.bf16 %v1740_v28, %v1738_v27  ;;  %v1747_v43 = vld [vmem:[%s6538_s7 + $0xc8] sm:$0xff]  ;;  %v2085_v28 = vld [vmem:[%s6540_s9 + $0xa0] sm:$0xff] }
 0x3db   : > { %3816 = vmatprep.subr.bf16.mxu0 %v3815_v40 }
 0x3de   : > { %3818 = vmatpush3.bf16.msra.mxu0 %v3815_v40 }
 0x3df   : > { %3820 = vmatprep.subr.bf16.mxu0 %v3819_v44 }
 0x3e2   : > { %3822 = vmatpush3.bf16.msra.mxu0 %v3819_v44  ;;  %v1749_v44 = vld [vmem:[%s6538_s7 + $0xd8] sm:$0xff] }
 0x3e3   : > { %3824 = vmatprep.subr.bf16.mxu0 %v3823_v47  ;;  %v3871_v45 = vpack.c.bf16 %v1749_v44, %v1747_v43  ;;  %v2100_v43 = vld [vmem:[%s6540_s9 + $0x118] sm:$0xff] }
 0x3e6   : > { %3826 = vmatpush3.bf16.msra.mxu0 %v3823_v47  ;;  %v1748_v47 = vld [vmem:[%s6538_s7 + $0xd0] sm:$0xff] }
 0x3e7   : > { %3828 = vmatprep.subr.bf16.mxu0 %v3827_v50  ;;  %v3873_v48 = vpack.c.bf16 %v1748_v47, %v1746_v46  ;;  %v2097_v46 = vld [vmem:[%s6540_s9 + $0x100] sm:$0xff]  ;;  %v2099_v47 = vld [vmem:[%s6540_s9 + $0x110] sm:$0xff] }
 0x3e9   : > { %3729 = vmatmul.mubr.msk.f32.vlgmr.msra.gmra.mrb[6].mxu0 %vm1347_vm11, %v1453_v54  ;;  %v3142_v54 = vld [vmem:[%s6538_s7 + $0x108] sm:$0xff] }
 0x3ea   : > { %3830 = vmatpush3.bf16.msra.mxu0 %v3827_v50  ;;  %3747 = vmatprep.mubr.msk.f32.mxu0 %vm1347_vm11, %v1546_v57  ;;  %v1753_v50 = vld [vmem:[%s6538_s7 + $0xf8] sm:$0xff]  ;;  %v3879_v57 = vpack.c.bf16 %v3144_v55, %v3142_v54  ;;  %v2106_v54 = vld [vmem:[%s6540_s9 + $0x148] sm:$0xff] }
 0x3eb   : > { %3832 = vmatprep.subr.bf16.mxu0 %v3831_v53  ;;  %v3875_v52 = vpack.c.bf16 %v1753_v50, %v1751_v49  ;;  %v2104_v49 = vld [vmem:[%s6540_s9 + $0x138] sm:$0xff]  ;;  %v3977_v50 = vpack.c.bf16 %v2099_v47, %v2097_v46  ;;  %v3170_v46 = vld [vmem:[%s6538_s7 + $0x1e8] sm:$0xff] }
 0x3ec   : > { %v2108_v55 = vld [vmem:[%s6540_s9 + $0x158] sm:$0xff] }
 0x3ed   : > { %v3172_v47 = vld [vmem:[%s6538_s7 + $0x1f8] sm:$0xff] }
 0x3ee   : > { %3834 = vmatpush3.bf16.msra.mxu0 %v3831_v53  ;;  %v1752_v53 = vld [vmem:[%s6538_s7 + $0xf0] sm:$0xff] }
 0x3ef   : > { %3836 = vmatprep.subr.bf16.mxu0 %v3835_v58  ;;  %v3877_v56 = vpack.c.bf16 %v1752_v53, %v1750_v51  ;;  %v2103_v53 = vld [vmem:[%s6540_s9 + $0x130] sm:$0xff] }
 0x3f2   : > { %3838 = vmatpush3.bf16.msra.mxu0 %v3835_v58  ;;  %v2066_v58 = vld [vmem:[%s6540_s9 + $0x8] sm:$0xff] }
 0x3f3   : > { %3840 = vmatprep.subr.bf16.mxu0 %v3839_v61 }
 0x3f6   : > { %3842 = vmatpush3.bf16.msra.mxu0 %v3839_v61  ;;  %v3943_v61 = vpack.c.bf16 %v2068_v59, %v2066_v58  ;;  %v2105_v58 = vld [vmem:[%s6540_s9 + $0x140] sm:$0xff]  ;;  %v2107_v59 = vld [vmem:[%s6540_s9 + $0x150] sm:$0xff] }
 0x3f7   : > { %3843 = vmatprep.subr.bf16.mxu0 %v4763_v0  ;;  %v1724_v0 = vld [vmem:[%s6538_s7 + $0x10] sm:$0xff] }
 0x3f8   : > { %v3849_v7 = vpack.c.bf16 %v1724_v0, %v1722_v3  ;;  %v2069_v0 = vld [vmem:[%s6540_s9 + $0x20] sm:$0xff] }
 0x3f9   : > { %3748 = vmatmul.mubr.msk.f32.vlgmr.msra.gmra.mrb[6].mxu0 %vm1347_vm11, %v1547_v62  ;;  %v2067_v62 = vld [vmem:[%s6540_s9 + $0x10] sm:$0xff] }
 0x3fa   : > { %3754 = vmatprep.mubr.msk.f32.mxu0 %vm4764_vm0, %v4765_v1  ;;  %3850 = vmatpush1.bf16.msra.mxu1 %v3849_v7  ;;  %v3945_v3 = vpack.c.bf16 %v2067_v62, %v2065_v60  ;;  %v2076_v7 = vld [vmem:[%s6540_s9 + $0x58] sm:$0xff]  ;;  %v2110_v60 = vld [vmem:[%s6540_s9 + $0x168] sm:$0xff]  ;;  %v3985_v62 = vpack.c.bf16 %v2107_v59, %v2105_v58  ;;  %vm2505_vm0 = vcmask 48128  }
 0x3fb   : > { %3852 = vmatprep.subr.bf16.mxu1 %v3851_v8  ;;  %v3949_v8 = vpack.c.bf16 %v2071_v5, %v2069_v0  ;;  %v3951_v9 = vpack.c.bf16 %v2076_v7, %v2074_v6  ;;  %v3141_v7 = vld [vmem:[%s6538_s7 + $0x100] sm:$0xff]  ;;  %v3178_v58 = vld [vmem:[%s6538_s7 + $0x228] sm:$0xff]  ;;  %v3180_v59 = vld [vmem:[%s6538_s7 + $0x238] sm:$0xff] }
 0x3fe   : > { %3854 = vmatpush1.bf16.msra.mxu1 %v3853_v13  ;;  %v2080_v13 = vld [vmem:[%s6540_s9 + $0x78] sm:$0xff] }
 0x3ff   : > { %3856 = vmatprep.subr.bf16.mxu1 %v3855_v14  ;;  %v3953_v14 = vpack.c.bf16 %v2075_v11, %v2073_v10  ;;  %v3955_v15 = vpack.c.bf16 %v2080_v13, %v2078_v12  ;;  %v3148_v10 = vld [vmem:[%s6538_s7 + $0x138] sm:$0xff]  ;;  %v3145_v13 = vld [vmem:[%s6538_s7 + $0x120] sm:$0xff] }
 0x402   : > { %3858 = vmatpush1.bf16.msra.mxu1 %v3857_v19  ;;  %v2084_v19 = vld [vmem:[%s6540_s9 + $0x98] sm:$0xff] }
 0x403   : > { %3860 = vmatprep.subr.bf16.mxu1 %v3859_v20  ;;  %v3957_v20 = vpack.c.bf16 %v2079_v17, %v2077_v16  ;;  %v3959_v21 = vpack.c.bf16 %v2084_v19, %v2082_v18  ;;  %v3150_v16 = vld [vmem:[%s6538_s7 + $0x148] sm:$0xff]  ;;  %v3152_v17 = vld [vmem:[%s6538_s7 + $0x158] sm:$0xff] }
 0x404   : > { %v3887_v19 = vpack.c.bf16 %v3152_v17, %v3150_v16  ;;  %v3189_v17 = vld [vmem:[%s6538_s7 + $0x280] sm:$0xff] }
 0x406   : > { %3862 = vmatpush1.bf16.msra.mxu1 %v3861_v25  ;;  %v2088_v25 = vld [vmem:[%s6540_s9 + $0xb8] sm:$0xff] }
 0x407   : > { %3864 = vmatprep.subr.bf16.mxu1 %v3863_v26  ;;  %v3961_v26 = vpack.c.bf16 %v2083_v23, %v2081_v22  ;;  %v3963_v27 = vpack.c.bf16 %v2088_v25, %v2086_v24  ;;  %v3154_v22 = vld [vmem:[%s6538_s7 + $0x168] sm:$0xff]  ;;  %v3156_v23 = vld [vmem:[%s6538_s7 + $0x178] sm:$0xff] }
 0x408   : > { %v3891_v25 = vpack.c.bf16 %v3156_v23, %v3154_v22  ;;  %v3193_v23 = vld [vmem:[%s6538_s7 + $0x2a0] sm:$0xff] }
 0x40a   : > { %3866 = vmatpush1.bf16.msra.mxu1 %v3865_v31  ;;  %v2092_v31 = vld [vmem:[%s6540_s9 + $0xd8] sm:$0xff] }
 0x40b   : > { %3868 = vmatprep.subr.bf16.mxu1 %v3867_v32  ;;  %v3965_v32 = vpack.c.bf16 %v2087_v29, %v2085_v28  ;;  %v3967_v33 = vpack.c.bf16 %v2092_v31, %v2090_v30  ;;  %v3158_v28 = vld [vmem:[%s6538_s7 + $0x188] sm:$0xff]  ;;  %v3160_v29 = vld [vmem:[%s6538_s7 + $0x198] sm:$0xff] }
 0x40c   : > { %v3895_v31 = vpack.c.bf16 %v3160_v29, %v3158_v28  ;;  %v3197_v29 = vld [vmem:[%s6538_s7 + $0x2c0] sm:$0xff] }
 0x40e   : > { %3870 = vmatpush1.bf16.msra.mxu1 %v3869_v35  ;;  %v2091_v35 = vld [vmem:[%s6540_s9 + $0xd0] sm:$0xff] }
 0x40f   : > { %3872 = vmatprep.subr.bf16.mxu1 %v3871_v45 }
 0x412   : > { %3874 = vmatpush1.bf16.msra.mxu1 %v3873_v48  ;;  %v2102_v48 = vld [vmem:[%s6540_s9 + $0x128] sm:$0xff] }
 0x413   : > { %3876 = vmatprep.subr.bf16.mxu1 %v3875_v52  ;;  %v3979_v51 = vpack.c.bf16 %v2104_v49, %v2102_v48  ;;  %v2101_v52 = vld [vmem:[%s6540_s9 + $0x120] sm:$0xff]  ;;  %v3907_v49 = vpack.c.bf16 %v3172_v47, %v3170_v46  ;;  %v2118_v46 = vld [vmem:[%s6540_s9 + $0x1a8] sm:$0xff]  ;;  %v2120_v47 = vld [vmem:[%s6540_s9 + $0x1b8] sm:$0xff] }
 0x416   : > { %3878 = vmatpush1.bf16.msra.mxu1 %v3877_v56  ;;  %v3981_v56 = vpack.c.bf16 %v2103_v53, %v2101_v52  ;;  %v3174_v52 = vld [vmem:[%s6538_s7 + $0x208] sm:$0xff]  ;;  %v3176_v53 = vld [vmem:[%s6538_s7 + $0x218] sm:$0xff] }
 0x417   : > { %3880 = vmatprep.subr.bf16.mxu1 %v3879_v57  ;;  %v3983_v57 = vpack.c.bf16 %v2108_v55, %v2106_v54  ;;  %v3911_v55 = vpack.c.bf16 %v3176_v53, %v3174_v52  ;;  %v2122_v52 = vld [vmem:[%s6540_s9 + $0x1c8] sm:$0xff]  ;;  %v2124_v53 = vld [vmem:[%s6540_s9 + $0x1d8] sm:$0xff] }
 0x4cc   : > { %v3749_v37 = vpop.f32.mrb[6].mxu0 }
 0x4cd   : > { %v4236_v38 = vadd.f32 %v3749_v37, %v3116_v36  ;;  %v1629_v39 = vpop.f32.mrb[7].mxu0  ;;  %v2096_v37 = vld [vmem:[%s6540_s9 + $0xf8] sm:$0xff] }
 0x4ce   : > { %v4237_v40 = vadd.f32 %v3116_v36, %v1629_v39  ;;  %v2094_v36 = vld [vmem:[%s6540_s9 + $0xe8] sm:$0xff] }
 0x4cf   : > { %v3971_v39 = vpack.c.bf16 %v2096_v37, %v2094_v36 }
 0x4d0   : > { %v3844_v41 = vpack.c.bf16 %v4236_v38, %v4237_v40  ;;  %v3969_v38 = vpack.c.bf16 %v2091_v35, %v2089_v34  ;;  %v2093_v40 = vld [vmem:[%s6540_s9 + $0xe0] sm:$0xff]  ;;  %v3162_v34 = vld [vmem:[%s6538_s7 + $0x1a8] sm:$0xff]  ;;  %v3164_v35 = vld [vmem:[%s6538_s7 + $0x1b8] sm:$0xff] }
 0x4d1   : > { %v3899_v37 = vpack.c.bf16 %v3164_v35, %v3162_v34  ;;  %v3201_v35 = vld [vmem:[%s6538_s7 + $0x2e0] sm:$0xff] }
 0x4d2   : > { %3846 = vmatpush3.bf16.msk.msra.mxu0 %vm3845_vm13, %v3844_v41  ;;  %v2095_v41 = vld [vmem:[%s6540_s9 + $0xf0] sm:$0xff] }
 0x4d3   : > { %3944 = vmatprep.subr.bf16.mxu0 %v3943_v61  ;;  %v3973_v44 = vpack.c.bf16 %v2095_v41, %v2093_v40  ;;  %v2112_v61 = vld [vmem:[%s6540_s9 + $0x178] sm:$0xff]  ;;  %v3166_v40 = vld [vmem:[%s6538_s7 + $0x1c8] sm:$0xff] }
 0x4d4   : > { %v3987_v63 = vpack.c.bf16 %v2112_v61, %v2110_v60  ;;  %v3168_v41 = vld [vmem:[%s6538_s7 + $0x1d8] sm:$0xff]  ;;  %v3915_v61 = vpack.c.bf16 %v3180_v59, %v3178_v58  ;;  %v2126_v58 = vld [vmem:[%s6540_s9 + $0x1e8] sm:$0xff] }
 0x4d5   : > { %3755 = vmatmul.mubr.msk.f32.vlgmr.msra.gmra.mrb[8].mxu0 %vm1641_vm14, %v1640_v42  ;;  %v2098_v42 = vld [vmem:[%s6540_s9 + $0x108] sm:$0xff]  ;;  %v2128_v59 = vld [vmem:[%s6540_s9 + $0x1f8] sm:$0xff] }
 0x4d6   : > { %3946 = vmatpush1.bf16.msra.mxu0 %v3945_v3  ;;  %v3975_v45 = vpack.c.bf16 %v2100_v43, %v2098_v42  ;;  %v2111_v3 = vld [vmem:[%s6540_s9 + $0x170] sm:$0xff]  ;;  %v3903_v43 = vpack.c.bf16 %v3168_v41, %v3166_v40  ;;  %v2114_v40 = vld [vmem:[%s6540_s9 + $0x188] sm:$0xff]  ;;  %v2116_v41 = vld [vmem:[%s6540_s9 + $0x198] sm:$0xff] }
 0x4d7   : > { %3948 = vmatprep.subr.bf16.mxu0 %v3947_v4  ;;  %v3989_v4 = vpack.c.bf16 %v2111_v3, %v2109_v2  ;;  %v3182_v3 = vld [vmem:[%s6538_s7 + $0x248] sm:$0xff] }
 0x4da   : > { %3950 = vmatpush1.bf16.msra.mxu0 %v3949_v8  ;;  %v3143_v8 = vld [vmem:[%s6538_s7 + $0x110] sm:$0xff] }
 0x4db   : > { %3952 = vmatprep.subr.bf16.mxu0 %v3951_v9  ;;  %v3146_v9 = vld [vmem:[%s6538_s7 + $0x128] sm:$0xff]  ;;  %v3881_v11 = vpack.c.bf16 %v3143_v8, %v3141_v7  ;;  %v3183_v7 = vld [vmem:[%s6538_s7 + $0x250] sm:$0xff] }
 0x4dc   : > { %v3883_v12 = vpack.c.bf16 %v3148_v10, %v3146_v9  ;;  %v3186_v8 = vld [vmem:[%s6538_s7 + $0x268] sm:$0xff]  ;;  %v3188_v9 = vld [vmem:[%s6538_s7 + $0x278] sm:$0xff] }
 0x4dd   : > { %v3923_v10 = vpack.c.bf16 %v3188_v9, %v3186_v8 }
 0x4de   : > { %3954 = vmatpush1.bf16.msra.mxu0 %v3953_v14  ;;  %v3147_v14 = vld [vmem:[%s6538_s7 + $0x130] sm:$0xff] }
 0x4df   : > { %3956 = vmatprep.subr.bf16.mxu0 %v3955_v15  ;;  %v3885_v18 = vpack.c.bf16 %v3147_v14, %v3145_v13  ;;  %v3190_v13 = vld [vmem:[%s6538_s7 + $0x288] sm:$0xff]  ;;  %v3192_v14 = vld [vmem:[%s6538_s7 + $0x298] sm:$0xff] }
 0x4e0   : > { %v3927_v16 = vpack.c.bf16 %v3192_v14, %v3190_v13 }
 0x4e2   : > { %3958 = vmatpush1.bf16.msra.mxu0 %v3957_v20  ;;  %v3149_v20 = vld [vmem:[%s6538_s7 + $0x140] sm:$0xff] }
 0x4e3   : > { %3960 = vmatprep.subr.bf16.mxu0 %v3959_v21  ;;  %v3151_v21 = vld [vmem:[%s6538_s7 + $0x150] sm:$0xff] }
 0x4e4   : > { %v3889_v24 = vpack.c.bf16 %v3151_v21, %v3149_v20  ;;  %v3196_v20 = vld [vmem:[%s6538_s7 + $0x2b8] sm:$0xff] }
 0x4e6   : > { %3962 = vmatpush1.bf16.msra.mxu0 %v3961_v26  ;;  %v3153_v26 = vld [vmem:[%s6538_s7 + $0x160] sm:$0xff] }
 0x4e7   : > { %3964 = vmatprep.subr.bf16.mxu0 %v3963_v27  ;;  %v3155_v27 = vld [vmem:[%s6538_s7 + $0x170] sm:$0xff] }
 0x4e8   : > { %v3893_v30 = vpack.c.bf16 %v3155_v27, %v3153_v26  ;;  %v3200_v26 = vld [vmem:[%s6538_s7 + $0x2d8] sm:$0xff] }
 0x4ea   : > { %3966 = vmatpush1.bf16.msra.mxu0 %v3965_v32  ;;  %v3157_v32 = vld [vmem:[%s6538_s7 + $0x180] sm:$0xff] }
 0x4eb   : > { %3968 = vmatprep.subr.bf16.mxu0 %v3967_v33  ;;  %v3159_v33 = vld [vmem:[%s6538_s7 + $0x190] sm:$0xff] }
 0x4ec   : > { %v3897_v36 = vpack.c.bf16 %v3159_v33, %v3157_v32  ;;  %v3204_v32 = vld [vmem:[%s6538_s7 + $0x2f8] sm:$0xff] }
 0x4ee   : > { %3970 = vmatpush1.bf16.msra.mxu0 %v3969_v38  ;;  %v3161_v38 = vld [vmem:[%s6538_s7 + $0x1a0] sm:$0xff] }
 0x4ef   : > { %3972 = vmatprep.subr.bf16.mxu0 %v3971_v39  ;;  %v3163_v39 = vld [vmem:[%s6538_s7 + $0x1b0] sm:$0xff] }
 0x4f0   : > { %v3901_v42 = vpack.c.bf16 %v3163_v39, %v3161_v38  ;;  %v4415_v39 = vld [vmem:[#allocation5] sm:$0xff] }
 0x4f2   : > { %3974 = vmatpush1.bf16.msra.mxu0 %v3973_v44  ;;  %v3165_v44 = vld [vmem:[%s6538_s7 + $0x1c0] sm:$0xff] }
 0x4f3   : > { %3976 = vmatprep.subr.bf16.mxu0 %v3975_v45  ;;  %v3167_v45 = vld [vmem:[%s6538_s7 + $0x1d0] sm:$0xff] }
 0x4f4   : > { %v3905_v48 = vpack.c.bf16 %v3167_v45, %v3165_v44  ;;  %v2115_v44 = vld [vmem:[%s6540_s9 + $0x190] sm:$0xff] }
 0x4f6   : > { %3978 = vmatpush1.bf16.msra.mxu0 %v3977_v50  ;;  %v3169_v50 = vld [vmem:[%s6538_s7 + $0x1e0] sm:$0xff] }
 0x4f7   : > { %3980 = vmatprep.subr.bf16.mxu0 %v3979_v51  ;;  %v3171_v51 = vld [vmem:[%s6538_s7 + $0x1f0] sm:$0xff] }
 0x4f8   : > { %v3909_v54 = vpack.c.bf16 %v3171_v51, %v3169_v50  ;;  %v2119_v50 = vld [vmem:[%s6540_s9 + $0x1b0] sm:$0xff] }
 0x4fa   : > { %3982 = vmatpush1.bf16.msra.mxu0 %v3981_v56  ;;  %v3173_v56 = vld [vmem:[%s6538_s7 + $0x200] sm:$0xff] }
 0x4fb   : > { %3984 = vmatprep.subr.bf16.mxu0 %v3983_v57  ;;  %v3175_v57 = vld [vmem:[%s6538_s7 + $0x210] sm:$0xff] }
 0x4fc   : > { %v3913_v60 = vpack.c.bf16 %v3175_v57, %v3173_v56  ;;  %v2123_v56 = vld [vmem:[%s6540_s9 + $0x1d0] sm:$0xff] }
 0x4fe   : > { %3986 = vmatpush1.bf16.msra.mxu0 %v3985_v62  ;;  %v3177_v62 = vld [vmem:[%s6538_s7 + $0x220] sm:$0xff] }
 0x4ff   : > { %3988 = vmatprep.subr.bf16.mxu0 %v3987_v63  ;;  %v3179_v63 = vld [vmem:[%s6538_s7 + $0x230] sm:$0xff] }
 0x502   : > { %3990 = vmatpush1.bf16.msra.mxu0 %v3989_v4  ;;  %v3184_v4 = vld [vmem:[%s6538_s7 + $0x258] sm:$0xff] }
 0x5a8   : > { %v1714_v0 = vpop.f32.mrb[8].mxu0 }
 0x5a9   : > { %v1718_v5 = vmax.f32 %v1714_v0, 0.0  ;;  %v3756_v6 = vpop.f32.mrb[9].mxu0  ;;  %v3917_v0 = vpack.c.bf16 %v3179_v63, %v3177_v62  ;;  %v2127_v62 = vld [vmem:[%s6540_s9 + $0x1f0] sm:$0xff] }
 0x5aa   : > { %v3181_v6 = vld [vmem:[%s6538_s7 + $0x240] sm:$0xff] }
 0x5ab   : > { %1720 = vst [vmem:[#allocation4 + $0x1] sm:$0x3f] %v1718_v5  ;;  %v3919_v5 = vpack.c.bf16 %v3184_v4, %v3182_v3  ;;  %v3208_v3 = vld [vmem:[%s6540_s9 + $0x218] sm:$0xff] }
 0x5b2   : > { %v1721_v15 = vld [vmem:[#allocation4] sm:$0x3f] }
 0x5b3   : > { %1831 = vmatmul.mubr.f32.vlgmr.msra.gmra.mrb[8].mxu1 %v1721_v15  ;;  %v1837_v2 = vld [vmem:[#allocation4 + $0x1] sm:$0x3f] }
 0x5b4   : > { %3882 = vmatpush1.bf16.msra.mxu1 %v3881_v11  ;;  %1935 = vmatprep.mubr.f32.mxu1 %v4765_v1  ;;  %v3185_v11 = vld [vmem:[%s6538_s7 + $0x260] sm:$0xff]  ;;  %v1944_v38 = vld [vmem:[#allocation4 + $0x2] sm:$0x3f] }
 0x5b5   : > { %3884 = vmatprep.subr.bf16.mxu1 %v3883_v12  ;;  %v3187_v12 = vld [vmem:[%s6538_s7 + $0x270] sm:$0xff] }
 0x5b6   : > { %v3925_v15 = vpack.c.bf16 %v3187_v12, %v3185_v11 }
 0x5b8   : > { %3886 = vmatpush1.bf16.msra.mxu1 %v3885_v18  ;;  %v3191_v18 = vld [vmem:[%s6538_s7 + $0x290] sm:$0xff] }
 0x5b9   : > { %3888 = vmatprep.subr.bf16.mxu1 %v3887_v19  ;;  %v3194_v19 = vld [vmem:[%s6538_s7 + $0x2a8] sm:$0xff]  ;;  %v3929_v21 = vpack.c.bf16 %v3191_v18, %v3189_v17  ;;  %v3205_v18 = vld [vmem:[%s6540_s9 + $0x200] sm:$0xff] }
 0x5ba   : > { %v3931_v22 = vpack.c.bf16 %v3196_v20, %v3194_v19  ;;  %v3207_v19 = vld [vmem:[%s6540_s9 + $0x210] sm:$0xff]  ;;  %v3210_v20 = vld [vmem:[%s6540_s9 + $0x228] sm:$0xff] }
 0x5bc   : > { %3890 = vmatpush1.bf16.msra.mxu1 %v3889_v24  ;;  %v3195_v24 = vld [vmem:[%s6538_s7 + $0x2b0] sm:$0xff] }
 0x5bd   : > { %3892 = vmatprep.subr.bf16.mxu1 %v3891_v25  ;;  %v3198_v25 = vld [vmem:[%s6538_s7 + $0x2c8] sm:$0xff]  ;;  %v3933_v27 = vpack.c.bf16 %v3195_v24, %v3193_v23  ;;  %v3209_v23 = vld [vmem:[%s6540_s9 + $0x220] sm:$0xff] }
 0x5be   : > { %v3935_v28 = vpack.c.bf16 %v3200_v26, %v3198_v25 }
 0x5c0   : > { %3894 = vmatpush1.bf16.msra.mxu1 %v3893_v30  ;;  %v3199_v30 = vld [vmem:[%s6538_s7 + $0x2d0] sm:$0xff] }
 0x5c1   : > { %3896 = vmatprep.subr.bf16.mxu1 %v3895_v31  ;;  %v3202_v31 = vld [vmem:[%s6538_s7 + $0x2e8] sm:$0xff]  ;;  %v3937_v33 = vpack.c.bf16 %v3199_v30, %v3197_v29 }
 0x5c2   : > { %v3939_v34 = vpack.c.bf16 %v3204_v32, %v3202_v31  ;;  %v3214_v30 = vld [vmem:[%s6540_s9 + $0x248] sm:$0xff]  ;;  %v3216_v31 = vld [vmem:[%s6540_s9 + $0x258] sm:$0xff] }
 0x5c4   : > { %3898 = vmatpush1.bf16.msra.mxu1 %v3897_v36  ;;  %v3203_v36 = vld [vmem:[%s6538_s7 + $0x2f0] sm:$0xff] }
 0x5c5   : > { %3900 = vmatprep.subr.bf16.mxu1 %v3899_v37  ;;  %v3941_v37 = vpack.c.bf16 %v3203_v36, %v3201_v35  ;;  %v3215_v35 = vld [vmem:[%s6540_s9 + $0x250] sm:$0xff]  ;;  %v3218_v36 = vld [vmem:[%s6540_s9 + $0x268] sm:$0xff] }
 0x5c8   : > { %3902 = vmatpush1.bf16.msra.mxu1 %v3901_v42  ;;  %v3991_v42 = vpack.c.bf16 %v2116_v41, %v2114_v40  ;;  %v3217_v40 = vld [vmem:[%s6540_s9 + $0x260] sm:$0xff]  ;;  %v3219_v41 = vld [vmem:[%s6540_s9 + $0x270] sm:$0xff] }
 0x5c9   : > { %3904 = vmatprep.subr.bf16.mxu1 %v3903_v43  ;;  %v2113_v43 = vld [vmem:[%s6540_s9 + $0x180] sm:$0xff] }
 0x5ca   : > { %v3993_v45 = vpack.c.bf16 %v2115_v44, %v2113_v43  ;;  %3992 = vmatprep.subr.bf16.mxu0 %v3991_v42  ;;  %v3222_v42 = vld [vmem:[%s6540_s9 + $0x288] sm:$0xff]  ;;  %v3224_v43 = vld [vmem:[%s6540_s9 + $0x298] sm:$0xff]  ;;  %v4021_v44 = vpack.c.bf16 %v3219_v41, %v3217_v40  ;;  %v3259_v40 = vld [vmem:[%s6540_s9 + $0x3b0] sm:$0xff] }
 0x5cb   : > { %v3262_v41 = vld [vmem:[%s6540_s9 + $0x3c8] sm:$0xff] }
 0x5cc   : > { %3906 = vmatpush1.bf16.msra.mxu1 %v3905_v48  ;;  %3994 = vmatpush1.bf16.msra.mxu0 %v3993_v45  ;;  %v3995_v48 = vpack.c.bf16 %v2120_v47, %v2118_v46  ;;  %v4023_v45 = vpack.c.bf16 %v3224_v43, %v3222_v42  ;;  %v3221_v46 = vld [vmem:[%s6540_s9 + $0x280] sm:$0xff]  ;;  %v3223_v47 = vld [vmem:[%s6540_s9 + $0x290] sm:$0xff]  ;;  %v3264_v42 = vld [vmem:[%s6540_s9 + $0x3d8] sm:$0xff] }
 0x5cd   : > { %3908 = vmatprep.subr.bf16.mxu1 %v3907_v49  ;;  %v2117_v49 = vld [vmem:[%s6540_s9 + $0x1a0] sm:$0xff] }
 0x5ce   : > { %v3997_v51 = vpack.c.bf16 %v2119_v50, %v2117_v49  ;;  %3996 = vmatprep.subr.bf16.mxu0 %v3995_v48  ;;  %v3226_v48 = vld [vmem:[%s6540_s9 + $0x2a8] sm:$0xff]  ;;  %v3228_v49 = vld [vmem:[%s6540_s9 + $0x2b8] sm:$0xff]  ;;  %v4025_v50 = vpack.c.bf16 %v3223_v47, %v3221_v46  ;;  %v3263_v46 = vld [vmem:[%s6540_s9 + $0x3d0] sm:$0xff] }
 0x5cf   : > { %v3266_v47 = vld [vmem:[%s6540_s9 + $0x3e8] sm:$0xff] }
 0x5d0   : > { %3910 = vmatpush1.bf16.msra.mxu1 %v3909_v54  ;;  %3998 = vmatpush1.bf16.msra.mxu0 %v3997_v51  ;;  %v3999_v54 = vpack.c.bf16 %v2124_v53, %v2122_v52  ;;  %v4027_v51 = vpack.c.bf16 %v3228_v49, %v3226_v48  ;;  %v3225_v52 = vld [vmem:[%s6540_s9 + $0x2a0] sm:$0xff]  ;;  %v3227_v53 = vld [vmem:[%s6540_s9 + $0x2b0] sm:$0xff]  ;;  %v3268_v48 = vld [vmem:[%s6540_s9 + $0x3f8] sm:$0xff] }
 0x5d1   : > { %3912 = vmatprep.subr.bf16.mxu1 %v3911_v55  ;;  %v2121_v55 = vld [vmem:[%s6540_s9 + $0x1c0] sm:$0xff] }
 0x5d2   : > { %v4001_v57 = vpack.c.bf16 %v2123_v56, %v2121_v55  ;;  %4000 = vmatprep.subr.bf16.mxu0 %v3999_v54  ;;  %v3230_v54 = vld [vmem:[%s6540_s9 + $0x2c8] sm:$0xff]  ;;  %v3232_v55 = vld [vmem:[%s6540_s9 + $0x2d8] sm:$0xff]  ;;  %v4029_v56 = vpack.c.bf16 %v3227_v53, %v3225_v52  ;;  %v3267_v52 = vld [vmem:[%s6540_s9 + $0x3f0] sm:$0xff] }
 0x5d3   : > { %1936 = vmatmul.mubr.f32.vlgmr.msra.gmra.mrb[8].mxu1 %v1837_v2  ;;  %v3206_v2 = vld [vmem:[%s6540_s9 + $0x208] sm:$0xff] }
 0x5d4   : > { %3914 = vmatpush1.bf16.msra.mxu1 %v3913_v60  ;;  %2042 = vmatprep.mubr.f32.mxu1 %v4765_v1  ;;  %v3921_v1 = vpack.c.bf16 %v3183_v7, %v3181_v6  ;;  %v2125_v60 = vld [vmem:[%s6540_s9 + $0x1e0] sm:$0xff]  ;;  %v4007_v4 = vpack.c.bf16 %v3208_v3, %v3206_v2  ;;  %v3235_v3 = vld [vmem:[%s6540_s9 + $0x2f0] sm:$0xff]  ;;  %v3270_v53 = vld [vmem:[%s6540_s9 + $0x408] sm:$0xff] }
 0x5d5   : > { %3916 = vmatprep.subr.bf16.mxu1 %v3915_v61  ;;  %4002 = vmatpush1.bf16.msra.mxu0 %v4001_v57  ;;  %v4003_v61 = vpack.c.bf16 %v2128_v59, %v2126_v58  ;;  %v4005_v63 = vpack.c.bf16 %v2127_v62, %v2125_v60  ;;  %v1754_v7 = vld [vmem:[#allocation14] sm:$0x3]  ;;  %v4031_v57 = vpack.c.bf16 %v3232_v55, %v3230_v54  ;;  %v3231_v59 = vld [vmem:[%s6540_s9 + $0x2d0] sm:$0xff]  ;;  %v3234_v60 = vld [vmem:[%s6540_s9 + $0x2e8] sm:$0xff] }
 0x5d6   : > { %v3229_v58 = vld [vmem:[%s6540_s9 + $0x2c0] sm:$0xff]  ;;  %v3272_v54 = vld [vmem:[%s6540_s9 + $0x418] sm:$0xff] }
 0x5d7   : > { %4004 = vmatprep.subr.bf16.mxu0 %v4003_v61  ;;  %v3236_v61 = vld [vmem:[%s6540_s9 + $0x2f8] sm:$0xff]  ;;  %v4033_v62 = vpack.c.bf16 %v3231_v59, %v3229_v58  ;;  %v3233_v2 = vld [vmem:[%s6540_s9 + $0x2e0] sm:$0xff]  ;;  %v3271_v58 = vld [vmem:[%s6540_s9 + $0x410] sm:$0xff] }
 0x5d8   : > { %3918 = vmatpush1.bf16.msra.mxu1 %v3917_v0  ;;  %v1756_v0 = vlaneseq }
 0x5d9   : > { %3920 = vmatprep.subr.bf16.mxu1 %v3919_v5  ;;  %4006 = vmatpush1.bf16.msra.mxu0 %v4005_v63  ;;  %v4035_v63 = vpack.c.bf16 %v3236_v61, %v3234_v60  ;;  %v3274_v60 = vld [vmem:[%s6540_s9 + $0x428] sm:$0xff]  ;;  %v3276_v61 = vld [vmem:[%s6540_s9 + $0x438] sm:$0xff] }
 0x5da   : > { %4008 = vmatprep.subr.bf16.mxu0 %v4007_v4  ;;  %v5793_v5 = vshrl.u32 %v1756_v0, 7  ;;  %v3238_v4 = vld [vmem:[%s6540_s9 + $0x308] sm:$0xff]  ;;  %v3240_v0 = vld [vmem:[%s6540_s9 + $0x318] sm:$0xff] }
 0x5dc   : > { %3922 = vmatpush1.bf16.msra.mxu1 %v3921_v1  ;;  %v1758_v6 = vsub.s32 0, %v5793_v5  ;;  %v1762_v8 = vsub.s32 1, %v5793_v5  ;;  %v2608_v5 = vld [vmem:[%s6594_s29 + $0x90] sm:$0xff] }
 0x5dd   : > { %3924 = vmatprep.subr.bf16.mxu1 %v3923_v10 }
 0x5de   : > { %v1759_v9 = vrot.slane %v1754_v7, %v1758_v6  ;;  %v1763_v1 = vrot.slane %v1754_v7, %v1762_v8  ;;  %v4037_v7 = vpack.c.bf16 %v3235_v3, %v3233_v2  ;;  %v4075_v3 = vpack.c.bf16 %v3276_v61, %v3274_v60  ;;  %v3309_v60 = vld [vmem:[%s6540_s9 + $0x540] sm:$0xff]  ;;  %v3311_v61 = vld [vmem:[%s6540_s9 + $0x550] sm:$0xff] }
 0x5e0   : > { %3926 = vmatpush1.bf16.msra.mxu1 %v3925_v15 }
 0x5e1   : > { %3928 = vmatprep.subr.bf16.mxu1 %v3927_v16 }
 0x5e4   : > { %3930 = vmatpush1.bf16.msra.mxu1 %v3929_v21  ;;  %v3212_v21 = vld [vmem:[%s6540_s9 + $0x238] sm:$0xff] }
 0x5e5   : > { %3932 = vmatprep.subr.bf16.mxu1 %v3931_v22  ;;  %v4009_v22 = vpack.c.bf16 %v3207_v19, %v3205_v18  ;;  %v4011_v26 = vpack.c.bf16 %v3212_v21, %v3210_v20  ;;  %v3248_v18 = vld [vmem:[%s6540_s9 + $0x358] sm:$0xff]  ;;  %v3245_v21 = vld [vmem:[%s6540_s9 + $0x340] sm:$0xff] }
 0x5e8   : > { %3934 = vmatpush1.bf16.msra.mxu1 %v3933_v27  ;;  %v3211_v27 = vld [vmem:[%s6540_s9 + $0x230] sm:$0xff] }
 0x5e9   : > { %3936 = vmatprep.subr.bf16.mxu1 %v3935_v28  ;;  %v4013_v32 = vpack.c.bf16 %v3211_v27, %v3209_v23  ;;  %v3250_v23 = vld [vmem:[%s6540_s9 + $0x368] sm:$0xff]  ;;  %v3249_v27 = vld [vmem:[%s6540_s9 + $0x360] sm:$0xff] }
 0x5ec   : > { %3938 = vmatpush1.bf16.msra.mxu1 %v3937_v33  ;;  %v4015_v33 = vpack.c.bf16 %v3216_v31, %v3214_v30  ;;  %v3256_v30 = vld [vmem:[%s6540_s9 + $0x398] sm:$0xff] }
 0x5ed   : > { %3940 = vmatprep.subr.bf16.mxu1 %v3939_v34  ;;  %v3213_v34 = vld [vmem:[%s6540_s9 + $0x240] sm:$0xff] }
 0x5f0   : > { %3942 = vmatpush1.bf16.msra.mxu1 %v3941_v37  ;;  %v3220_v37 = vld [vmem:[%s6540_s9 + $0x278] sm:$0xff] }
 0x5f3   : > { %2043 = vmatmul.mubr.f32.vlgmr.msra.gmra.mrb[8].mxu1 %v1944_v38  ;;  %v4017_v38 = vpack.c.bf16 %v3215_v35, %v3213_v34  ;;  %v3255_v34 = vld [vmem:[%s6540_s9 + $0x390] sm:$0xff]  ;;  %v3258_v35 = vld [vmem:[%s6540_s9 + $0x3a8] sm:$0xff] }
 0x5f4   : > { %2580 = vmatprep.mubr.f32.mxu1 %v4415_v39  ;;  %v4019_v39 = vpack.c.bf16 %v3220_v37, %v3218_v36  ;;  %v3260_v36 = vld [vmem:[%s6540_s9 + $0x3b8] sm:$0xff] }
 0x6c6   : > { %v2044_v10 = vpop.f32.mrb[8].mxu1 }
 0x6c7   : > { %v4238_v11 = vadd.f32 %v2044_v10, %v1759_v9  ;;  %v2046_v12 = vpop.f32.mrb[9].mxu1  ;;  %v4039_v9 = vpack.c.bf16 %v3240_v0, %v3238_v4  ;;  %v3239_v10 = vld [vmem:[%s6540_s9 + $0x310] sm:$0xff]  ;;  %v3273_v4 = vld [vmem:[%s6540_s9 + $0x420] sm:$0xff] }
 0x6c8   : > { %v4239_v13 = vadd.f32 %v2046_v12, %v1763_v1  ;;  %v3237_v1 = vld [vmem:[%s6540_s9 + $0x300] sm:$0xff]  ;;  %v3244_v12 = vld [vmem:[%s6540_s9 + $0x338] sm:$0xff]  ;;  %v3275_v0 = vld [vmem:[%s6540_s9 + $0x430] sm:$0xff] }
 0x6c9   : > { %v2051_v14 = vmax.f32 %v4238_v11, 0.0  ;;  %v3242_v11 = vld [vmem:[%s6540_s9 + $0x328] sm:$0xff] }
 0x6ca   : > { %v2052_v15 = vmax.f32 %v4239_v13, 0.0  ;;  %v4041_v13 = vpack.c.bf16 %v3239_v10, %v3237_v1  ;;  %v3280_v1 = vld [vmem:[%s6540_s9 + $0x458] sm:$0xff]  ;;  %v4077_v10 = vpack.c.bf16 %v3275_v0, %v3273_v4  ;;  %v3313_v4 = vld [vmem:[%s6540_s9 + $0x560] sm:$0xff]  ;;  %v3315_v0 = vld [vmem:[%s6540_s9 + $0x570] sm:$0xff] }
 0x6cb   : > { %v2057_v16 = vrot.slane %v2051_v14, 7  ;;  %v4043_v14 = vpack.c.bf16 %v3244_v12, %v3242_v11  ;;  %v3277_v12 = vld [vmem:[%s6540_s9 + $0x440] sm:$0xff] }
 0x6cc   : > { %v2058_v17 = vrot.slane %v2052_v15, 7  ;;  %v3241_v15 = vld [vmem:[%s6540_s9 + $0x320] sm:$0xff] }
 0x6cd   : > { %2061 = vst [vmem:[#allocation5] sm:$0x7e] %v2057_v16  ;;  %v3243_v16 = vld [vmem:[%s6540_s9 + $0x330] sm:$0xff] }
 0x6ce   : > { %2062 = vst [vmem:[#allocation5 + $0x8] sm:$0x7e] %v2058_v17  ;;  %v3246_v17 = vld [vmem:[%s6540_s9 + $0x348] sm:$0xff]  ;;  %v4045_v19 = vpack.c.bf16 %v3243_v16, %v3241_v15  ;;  %v3284_v15 = vld [vmem:[%s6540_s9 + $0x478] sm:$0xff] }
 0x6cf   : > { %v4047_v20 = vpack.c.bf16 %v3248_v18, %v3246_v17  ;;  %v3281_v18 = vld [vmem:[%s6540_s9 + $0x460] sm:$0xff] }
 0x6d4   : > { %v2063_v28 = vld [vmem:[#allocation5] sm:$0x3f] }
 0x6d5   : > { %v2064_v24 = vld [vmem:[#allocation5 + $0x8] sm:$0x3f]  ;;  %v2212_v59 = vld [vmem:[#allocation5] sm:$0x7e] }
 0x6d6   : > { %v2213_v25 = vld [vmem:[#allocation5 + $0x8] sm:$0x7e]  ;;  %2205 = vmatprep.mubr.f32.mxu0 %v2064_v24  ;;  %v2281_v2 = vrot.slane %v2212_v59, 1 }
 0x6d7   : > { %v2282_v29 = vrot.slane %v2213_v25, 1  ;;  %2206 = vmatmul.mubr.f32.vlgmr.msra.gmra.mrb[10].mxu0 %v2063_v28  ;;  %v3252_v24 = vld [vmem:[%s6540_s9 + $0x378] sm:$0xff]  ;;  %v3251_v28 = vld [vmem:[%s6540_s9 + $0x370] sm:$0xff] }
 0x6d8   : > { %4010 = vmatpush1.bf16.msra.mxu0 %v4009_v22  ;;  %v3247_v22 = vld [vmem:[%s6540_s9 + $0x350] sm:$0xff]  ;;  %v4053_v31 = vpack.c.bf16 %v3251_v28, %v3249_v27  ;;  %v3292_v27 = vld [vmem:[%s6540_s9 + $0x4b8] sm:$0xff] }
 0x6d9   : > { %2349 = vmatprep.mubr.f32.mxu0 %v2282_v29  ;;  %4012 = vmatprep.subr.bf16.mxu0 %v4011_v26  ;;  %v4049_v25 = vpack.c.bf16 %v3247_v22, %v3245_v21  ;;  %v4051_v26 = vpack.c.bf16 %v3252_v24, %v3250_v23  ;;  %v3254_v29 = vld [vmem:[%s6540_s9 + $0x388] sm:$0xff]  ;;  %v3288_v21 = vld [vmem:[%s6540_s9 + $0x498] sm:$0xff]  ;;  %v3285_v24 = vld [vmem:[%s6540_s9 + $0x480] sm:$0xff] }
 0x6dc   : > { %4014 = vmatpush1.bf16.msra.mxu0 %v4013_v32  ;;  %v4055_v32 = vpack.c.bf16 %v3256_v30, %v3254_v29  ;;  %v3289_v30 = vld [vmem:[%s6540_s9 + $0x4a0] sm:$0xff] }
 0x6dd   : > { %4016 = vmatprep.subr.bf16.mxu0 %v4015_v33  ;;  %v3253_v33 = vld [vmem:[%s6540_s9 + $0x380] sm:$0xff] }
 0x6de   : > { %v4057_v37 = vpack.c.bf16 %v3255_v34, %v3253_v33  ;;  %v3296_v33 = vld [vmem:[%s6540_s9 + $0x4d8] sm:$0xff] }
 0x6e0   : > { %4018 = vmatpush1.bf16.msra.mxu0 %v4017_v38  ;;  %v4059_v38 = vpack.c.bf16 %v3260_v36, %v3258_v35  ;;  %v3293_v36 = vld [vmem:[%s6540_s9 + $0x4c0] sm:$0xff] }
 0x6e1   : > { %4020 = vmatprep.subr.bf16.mxu0 %v4019_v39  ;;  %v3257_v39 = vld [vmem:[%s6540_s9 + $0x3a0] sm:$0xff] }
 0x6e2   : > { %v4061_v43 = vpack.c.bf16 %v3259_v40, %v3257_v39  ;;  %v3300_v39 = vld [vmem:[%s6540_s9 + $0x4f8] sm:$0xff] }
 0x6e4   : > { %4022 = vmatpush1.bf16.msra.mxu0 %v4021_v44  ;;  %v4063_v44 = vpack.c.bf16 %v3264_v42, %v3262_v41  ;;  %v3297_v42 = vld [vmem:[%s6540_s9 + $0x4e0] sm:$0xff] }
 0x6e5   : > { %4024 = vmatprep.subr.bf16.mxu0 %v4023_v45  ;;  %v3261_v45 = vld [vmem:[%s6540_s9 + $0x3c0] sm:$0xff] }
 0x6e6   : > { %v4065_v49 = vpack.c.bf16 %v3263_v46, %v3261_v45  ;;  %v3304_v45 = vld [vmem:[%s6540_s9 + $0x518] sm:$0xff] }
 0x6e8   : > { %4026 = vmatpush1.bf16.msra.mxu0 %v4025_v50  ;;  %v4067_v50 = vpack.c.bf16 %v3268_v48, %v3266_v47  ;;  %v3301_v48 = vld [vmem:[%s6540_s9 + $0x500] sm:$0xff] }
 0x6e9   : > { %4028 = vmatprep.subr.bf16.mxu0 %v4027_v51  ;;  %v3265_v51 = vld [vmem:[%s6540_s9 + $0x3e0] sm:$0xff] }
 0x6ea   : > { %v4069_v55 = vpack.c.bf16 %v3267_v52, %v3265_v51  ;;  %v3308_v51 = vld [vmem:[%s6540_s9 + $0x538] sm:$0xff] }
 0x6ec   : > { %4030 = vmatpush1.bf16.msra.mxu0 %v4029_v56  ;;  %v4071_v56 = vpack.c.bf16 %v3272_v54, %v3270_v53  ;;  %v3305_v54 = vld [vmem:[%s6540_s9 + $0x520] sm:$0xff] }
 0x6ed   : > { %4032 = vmatprep.subr.bf16.mxu0 %v4031_v57  ;;  %v3269_v57 = vld [vmem:[%s6540_s9 + $0x400] sm:$0xff] }
 0x6f0   : > { %4034 = vmatpush1.bf16.msra.mxu0 %v4033_v62  ;;  %v2359_v62 = vld [vmem:[#allocation5 + $0x8] sm:$0xfc] }
 0x6f1   : > { %4036 = vmatprep.subr.bf16.mxu0 %v4035_v63  ;;  %v4073_v63 = vpack.c.bf16 %v3271_v58, %v3269_v57  ;;  %v3312_v57 = vld [vmem:[%s6540_s9 + $0x558] sm:$0xff] }
 0x6f4   : > { %4038 = vmatpush1.bf16.msra.mxu0 %v4037_v7  ;;  %v2428_v7 = vrot.slane %v2359_v62, 2  ;;  %v3314_v62 = vld [vmem:[%s6540_s9 + $0x568] sm:$0xff] }
 0x6f5   : > { %4040 = vmatprep.subr.bf16.mxu0 %v4039_v9  ;;  %v3278_v9 = vld [vmem:[%s6540_s9 + $0x448] sm:$0xff] }
 0x6f6   : > { %v4079_v11 = vpack.c.bf16 %v3280_v1, %v3278_v9  ;;  %v3320_v9 = vld [vmem:[%s6540_s9 + $0x598] sm:$0xff]  ;;  %v4117_v1 = vpack.c.bf16 %v3315_v0, %v3313_v4  ;;  %v2598_v4 = vld [vmem:[%s6594_s29 + $0x40] sm:$0xff]  ;;  %v2599_v0 = vld [vmem:[%s6594_s29 + $0x48] sm:$0xff] }
 0x6f8   : > { %4042 = vmatpush1.bf16.msra.mxu0 %v4041_v13  ;;  %v3279_v13 = vld [vmem:[%s6540_s9 + $0x450] sm:$0xff] }
 0x6f9   : > { %4044 = vmatprep.subr.bf16.mxu0 %v4043_v14  ;;  %v3282_v14 = vld [vmem:[%s6540_s9 + $0x468] sm:$0xff]  ;;  %v4081_v16 = vpack.c.bf16 %v3279_v13, %v3277_v12  ;;  %v3319_v12 = vld [vmem:[%s6540_s9 + $0x590] sm:$0xff] }
 0x6fa   : > { %v4083_v17 = vpack.c.bf16 %v3284_v15, %v3282_v14  ;;  %v3322_v13 = vld [vmem:[%s6540_s9 + $0x5a8] sm:$0xff]  ;;  %v3324_v14 = vld [vmem:[%s6540_s9 + $0x5b8] sm:$0xff] }
 0x6fc   : > { %4046 = vmatpush1.bf16.msra.mxu0 %v4045_v19  ;;  %v3283_v19 = vld [vmem:[%s6540_s9 + $0x470] sm:$0xff] }
 0x6fd   : > { %4048 = vmatprep.subr.bf16.mxu0 %v4047_v20  ;;  %v3286_v20 = vld [vmem:[%s6540_s9 + $0x488] sm:$0xff]  ;;  %v4085_v22 = vpack.c.bf16 %v3283_v19, %v3281_v18  ;;  %v3323_v18 = vld [vmem:[%s6540_s9 + $0x5b0] sm:$0xff] }
 0x6fe   : > { %v4087_v23 = vpack.c.bf16 %v3288_v21, %v3286_v20  ;;  %v3326_v19 = vld [vmem:[%s6540_s9 + $0x5c8] sm:$0xff]  ;;  %v3328_v20 = vld [vmem:[%s6540_s9 + $0x5d8] sm:$0xff] }
 0x700   : > { %4050 = vmatpush1.bf16.msra.mxu0 %v4049_v25  ;;  %v3287_v25 = vld [vmem:[%s6540_s9 + $0x490] sm:$0xff] }
 0x701   : > { %4052 = vmatprep.subr.bf16.mxu0 %v4051_v26  ;;  %v3290_v26 = vld [vmem:[%s6540_s9 + $0x4a8] sm:$0xff]  ;;  %v4089_v28 = vpack.c.bf16 %v3287_v25, %v3285_v24  ;;  %v3327_v24 = vld [vmem:[%s6540_s9 + $0x5d0] sm:$0xff] }
 0x702   : > { %v4091_v29 = vpack.c.bf16 %v3292_v27, %v3290_v26  ;;  %v3330_v25 = vld [vmem:[%s6540_s9 + $0x5e8] sm:$0xff]  ;;  %v3332_v26 = vld [vmem:[%s6540_s9 + $0x5f8] sm:$0xff] }
 0x704   : > { %4054 = vmatpush1.bf16.msra.mxu0 %v4053_v31  ;;  %v3291_v31 = vld [vmem:[%s6540_s9 + $0x4b0] sm:$0xff] }
 0x705   : > { %4056 = vmatprep.subr.bf16.mxu0 %v4055_v32  ;;  %v3294_v32 = vld [vmem:[%s6540_s9 + $0x4c8] sm:$0xff]  ;;  %v4093_v34 = vpack.c.bf16 %v3291_v31, %v3289_v30  ;;  %v3331_v30 = vld [vmem:[%s6540_s9 + $0x5f0] sm:$0xff] }
 0x706   : > { %v4095_v35 = vpack.c.bf16 %v3296_v33, %v3294_v32  ;;  %v2358_v32 = vld [vmem:[#allocation5] sm:$0xfc] }
 0x707   : > { %v2427_v33 = vrot.slane %v2358_v32, 2  ;;  %v3354_v32 = vld [vmem:[%s6594_s29 + $0x190] sm:$0xff] }
 0x708   : > { %4058 = vmatpush1.bf16.msra.mxu0 %v4057_v37  ;;  %v3295_v37 = vld [vmem:[%s6540_s9 + $0x4d0] sm:$0xff] }
 0x709   : > { %4060 = vmatprep.subr.bf16.mxu0 %v4059_v38  ;;  %v3298_v38 = vld [vmem:[%s6540_s9 + $0x4e8] sm:$0xff]  ;;  %v4097_v40 = vpack.c.bf16 %v3295_v37, %v3293_v36  ;;  %v2606_v37 = vld [vmem:[%s6593_s22 + $0x80] sm:$0xff] }
 0x70a   : > { %v4099_v41 = vpack.c.bf16 %v3300_v39, %v3298_v38  ;;  %v2607_v38 = vld [vmem:[%s6594_s29 + $0x88] sm:$0xff] }
 0x70c   : > { %4062 = vmatpush1.bf16.msra.mxu0 %v4061_v43  ;;  %v3299_v43 = vld [vmem:[%s6540_s9 + $0x4f0] sm:$0xff] }
 0x70d   : > { %4064 = vmatprep.subr.bf16.mxu0 %v4063_v44  ;;  %v3302_v44 = vld [vmem:[%s6540_s9 + $0x508] sm:$0xff]  ;;  %v4101_v46 = vpack.c.bf16 %v3299_v43, %v3297_v42  ;;  %v4135_v43 = vpack.c.bf16 %v2607_v38, %v2606_v37 }
 0x70e   : > { %v4103_v47 = vpack.c.bf16 %v3304_v45, %v3302_v44  ;;  %v2504_v45 = vld [vmem:[%s6595_s14] sm:$0x7]  ;;  %s4668_s14 = scalar_lea.vmem %s6491_s17, 16 }
 0x70f   : > { %p4669_p6 = scmp.ne.s32.totalorder %s6491_s17, %s4668_s14  ;;  %p4676_p2 = scmp.lt.s32.totalorder %s4674_s20, %s4668_s14 }
 0x710   : > { %4066 = vmatpush1.bf16.msra.mxu0 %v4065_v49  ;;  %v3303_v49 = vld [vmem:[%s6540_s9 + $0x510] sm:$0xff] }
 0x711   : > { %4068 = vmatprep.subr.bf16.mxu0 %v4067_v50  ;;  %v3306_v50 = vld [vmem:[%s6540_s9 + $0x528] sm:$0xff]  ;;  %v4105_v52 = vpack.c.bf16 %v3303_v49, %v3301_v48  ;;  %v2592_v48 = vld [vmem:[%s6594_s29 + $0x10] sm:$0xff]  ;;  %v2593_v49 = vld [vmem:[%s6594_s29 + $0x18] sm:$0xff]  ;;  %p4670_p5 = pnand %p4669_p6, %p6599_p9  ;;  %p4677_p3 = por %p4676_p2, %p4675_p0 }
 0x712   : > { %v4107_v53 = vpack.c.bf16 %v3308_v51, %v3306_v50  ;;  %v2610_v50 = vld [vmem:[%s6594_s29 + $0xa0] sm:$0xff]  ;;  %v2611_v51 = vld [vmem:[%s6594_s29 + $0xa8] sm:$0xff] }
 0x713   : > { %p4671_p10 = pneg %p4670_p5 }
 0x714   : > { %4070 = vmatpush1.bf16.msra.mxu0 %v4069_v55  ;;  %v3307_v55 = vld [vmem:[%s6540_s9 + $0x530] sm:$0xff] }
 0x715   : > { %4072 = vmatprep.subr.bf16.mxu0 %v4071_v56  ;;  %v3310_v56 = vld [vmem:[%s6540_s9 + $0x548] sm:$0xff]  ;;  %v4109_v58 = vpack.c.bf16 %v3307_v55, %v3305_v54  ;;  %v2594_v54 = vld [vmem:[%s6594_s29 + $0x20] sm:$0xff]  ;;  %p4678_p4 = pnand %p4677_p3, %p4671_p10 }
 0x716   : > { %v4111_v59 = vpack.c.bf16 %v3312_v57, %v3310_v56  ;;  %v2595_v55 = vld [vmem:[%s6594_s29 + $0x28] sm:$0xff]  ;;  %v2612_v56 = vld [vmem:[%s6594_s29 + $0xb0] sm:$0xff]  ;;  %v2613_v57 = vld [vmem:[%s6594_s29 + $0xb8] sm:$0xff] }
 0x717   : > { %2350 = vmatmul.mubr.f32.vlgmr.msra.gmra.mrb[10].mxu0 %v2281_v2  ;;  %v4113_v2 = vpack.c.bf16 %v3311_v61, %v3309_v60  ;;  %v2596_v60 = vld [vmem:[%s6594_s29 + $0x30] sm:$0xff]  ;;  %v2597_v61 = vld [vmem:[%s6594_s29 + $0x38] sm:$0xff] }
 0x718   : > { %4074 = vmatpush1.bf16.msra.mxu0 %v4073_v63  ;;  %2495 = vmatprep.mubr.f32.mxu0 %v2428_v7  ;;  %v3316_v63 = vld [vmem:[%s6540_s9 + $0x578] sm:$0xff]  ;;  %v3318_v7 = vld [vmem:[%s6540_s9 + $0x588] sm:$0xff] }
 0x719   : > { %4076 = vmatprep.subr.bf16.mxu0 %v4075_v3  ;;  %v4115_v3 = vpack.c.bf16 %v3316_v63, %v3314_v62  ;;  %v2614_v62 = vld [vmem:[%s6594_s29 + $0xc0] sm:$0xff]  ;;  %v2615_v63 = vld [vmem:[%s6594_s29 + $0xc8] sm:$0xff] }
 0x71c   : > { %4078 = vmatpush1.bf16.msra.mxu0 %v4077_v10  ;;  %v4119_v10 = vpack.c.bf16 %v3320_v9, %v3318_v7  ;;  %v2616_v7 = vld [vmem:[%s6594_s29 + $0xd0] sm:$0xff]  ;;  %v2617_v9 = vld [vmem:[%s6594_s29 + $0xd8] sm:$0xff] }
 0x71d   : > { %4080 = vmatprep.subr.bf16.mxu0 %v4079_v11  ;;  %v3317_v11 = vld [vmem:[%s6540_s9 + $0x580] sm:$0xff] }
 0x71e   : > { %v4121_v15 = vpack.c.bf16 %v3319_v12, %v3317_v11  ;;  %v2600_v11 = vld [vmem:[%s6594_s29 + $0x50] sm:$0xff]  ;;  %v2601_v12 = vld [vmem:[%s6594_s29 + $0x58] sm:$0xff] }
 0x720   : > { %4082 = vmatpush1.bf16.msra.mxu0 %v4081_v16  ;;  %v4123_v16 = vpack.c.bf16 %v3324_v14, %v3322_v13  ;;  %v2618_v13 = vld [vmem:[%s6594_s29 + $0xe0] sm:$0xff]  ;;  %v2619_v14 = vld [vmem:[%s6594_s29 + $0xe8] sm:$0xff] }
 0x721   : > { %4084 = vmatprep.subr.bf16.mxu0 %v4083_v17  ;;  %v3321_v17 = vld [vmem:[%s6540_s9 + $0x5a0] sm:$0xff] }
 0x722   : > { %v4125_v21 = vpack.c.bf16 %v3323_v18, %v3321_v17  ;;  %v2602_v17 = vld [vmem:[%s6594_s29 + $0x60] sm:$0xff]  ;;  %v2603_v18 = vld [vmem:[%s6594_s29 + $0x68] sm:$0xff] }
 0x724   : > { %4086 = vmatpush1.bf16.msra.mxu0 %v4085_v22  ;;  %v4127_v22 = vpack.c.bf16 %v3328_v20, %v3326_v19  ;;  %v4161_v19 = vpack.c.bf16 %v2603_v18, %v2602_v17  ;;  %v2620_v20 = vld [vmem:[%s6594_s29 + $0xf0] sm:$0xff]  ;;  %v3368_v18 = vld [vmem:[%s6594_s29 + $0x200] sm:$0xff] }
 0x725   : > { %4088 = vmatprep.subr.bf16.mxu0 %v4087_v23  ;;  %v3325_v23 = vld [vmem:[%s6540_s9 + $0x5c0] sm:$0xff] }
 0x726   : > { %v4129_v27 = vpack.c.bf16 %v3327_v24, %v3325_v23  ;;  %v2604_v23 = vld [vmem:[%s6594_s29 + $0x70] sm:$0xff]  ;;  %v2605_v24 = vld [vmem:[%s6594_s29 + $0x78] sm:$0xff] }
 0x728   : > { %4090 = vmatpush1.bf16.msra.mxu0 %v4089_v28  ;;  %v4131_v28 = vpack.c.bf16 %v3332_v26, %v3330_v25  ;;  %v4165_v25 = vpack.c.bf16 %v2605_v24, %v2604_v23  ;;  %v3352_v26 = vld [vmem:[%s6594_s29 + $0x180] sm:$0xff] }
 0x729   : > { %4092 = vmatprep.subr.bf16.mxu0 %v4091_v29  ;;  %v3329_v29 = vld [vmem:[%s6540_s9 + $0x5e0] sm:$0xff] }
 0x72a   : > { %v4133_v31 = vpack.c.bf16 %v3331_v30, %v3329_v29  ;;  %v3336_v29 = vld [vmem:[%s6594_s29 + $0x100] sm:$0xff]  ;;  %v3337_v30 = vld [vmem:[%s6594_s29 + $0x108] sm:$0xff] }
 0x72c   : > { %4094 = vmatpush1.bf16.msra.mxu0 %v4093_v34  ;;  %v2129_v34 = vld [vmem:[#allocation15] sm:$0x3] }
 0x72d   : > { %4096 = vmatprep.subr.bf16.mxu0 %v4095_v35  ;;  %v2138_v35 = vrot.slane %v2129_v34, %v1762_v8  ;;  %v2134_v36 = vrot.slane %v2129_v34, %v1758_v6  ;;  %v2591_v8 = vld [vmem:[%s6594_s29 + $0x8] sm:$0xff]  ;;  %v2609_v6 = vld [vmem:[%s6594_s29 + $0x98] sm:$0xff] }
 0x730   : > { %4098 = vmatpush1.bf16.msra.mxu0 %v4097_v40  ;;  %v2590_v40 = vld [vmem:[%s6594_s29] sm:$0xff] }
 0x731   : > { %4100 = vmatprep.subr.bf16.mxu0 %v4099_v41 }
 0x734   : > { %4102 = vmatpush1.bf16.msra.mxu0 %v4101_v46  ;;  %v4137_v46 = vpack.c.bf16 %v2591_v8, %v2590_v40  ;;  %v3339_v40 = vld [vmem:[%s6594_s29 + $0x118] sm:$0xff] }
 0x735   : > { %4104 = vmatprep.subr.bf16.mxu0 %v4103_v47  ;;  %v4139_v47 = vpack.c.bf16 %v2609_v6, %v2608_v5  ;;  %v3357_v5 = vld [vmem:[%s6594_s29 + $0x1a8] sm:$0xff] }
 0x738   : > { %4106 = vmatpush1.bf16.msra.mxu0 %v4105_v52  ;;  %v4141_v52 = vpack.c.bf16 %v2593_v49, %v2592_v48  ;;  %v3342_v49 = vld [vmem:[%s6594_s29 + $0x130] sm:$0xff] }
 0x739   : > { %4108 = vmatprep.subr.bf16.mxu0 %v4107_v53  ;;  %v4143_v53 = vpack.c.bf16 %v2611_v51, %v2610_v50  ;;  %v3343_v50 = vld [vmem:[%s6594_s29 + $0x138] sm:$0xff]  ;;  %v3360_v51 = vld [vmem:[%s6594_s29 + $0x1c0] sm:$0xff] }
 0x73c   : > { %4110 = vmatpush1.bf16.msra.mxu0 %v4109_v58  ;;  %v4145_v58 = vpack.c.bf16 %v2595_v55, %v2594_v54  ;;  %v3344_v55 = vld [vmem:[%s6594_s29 + $0x140] sm:$0xff] }
 0x73d   : > { %4112 = vmatprep.subr.bf16.mxu0 %v4111_v59  ;;  %v4147_v59 = vpack.c.bf16 %v2613_v57, %v2612_v56  ;;  %v3345_v56 = vld [vmem:[%s6594_s29 + $0x148] sm:$0xff]  ;;  %v3362_v57 = vld [vmem:[%s6594_s29 + $0x1d0] sm:$0xff] }
 0x740   : > { %4114 = vmatpush1.bf16.msra.mxu0 %v4113_v2  ;;  %v4149_v2 = vpack.c.bf16 %v2597_v61, %v2596_v60  ;;  %v3346_v61 = vld [vmem:[%s6594_s29 + $0x150] sm:$0xff] }
 0x741   : > { %4116 = vmatprep.subr.bf16.mxu0 %v4115_v3  ;;  %v4151_v3 = vpack.c.bf16 %v2615_v63, %v2614_v62  ;;  %v3347_v62 = vld [vmem:[%s6594_s29 + $0x158] sm:$0xff]  ;;  %v3364_v63 = vld [vmem:[%s6594_s29 + $0x1e0] sm:$0xff] }
 0x744   : > { %4118 = vmatpush1.bf16.msra.mxu0 %v4117_v1  ;;  %v4153_v1 = vpack.c.bf16 %v2599_v0, %v2598_v4  ;;  %v3348_v0 = vld [vmem:[%s6594_s29 + $0x160] sm:$0xff] }
 0x745   : > { %4120 = vmatprep.subr.bf16.mxu0 %v4119_v10  ;;  %v4155_v10 = vpack.c.bf16 %v2617_v9, %v2616_v7  ;;  %v3349_v7 = vld [vmem:[%s6594_s29 + $0x168] sm:$0xff]  ;;  %v3366_v9 = vld [vmem:[%s6594_s29 + $0x1f0] sm:$0xff] }
 0x748   : > { %4122 = vmatpush1.bf16.msra.mxu0 %v4121_v15  ;;  %v4157_v15 = vpack.c.bf16 %v2601_v12, %v2600_v11  ;;  %v3350_v12 = vld [vmem:[%s6594_s29 + $0x170] sm:$0xff] }
 0x749   : > { %4124 = vmatprep.subr.bf16.mxu0 %v4123_v16  ;;  %v4159_v16 = vpack.c.bf16 %v2619_v14, %v2618_v13  ;;  %v3351_v13 = vld [vmem:[%s6594_s29 + $0x178] sm:$0xff]  ;;  %v3384_v14 = vld [vmem:[%s6594_s29 + $0x280] sm:$0xff] }
 0x74c   : > { %4126 = vmatpush1.bf16.msra.mxu0 %v4125_v21  ;;  %v2621_v21 = vld [vmem:[%s6594_s29 + $0xf8] sm:$0xff] }
 0x74d   : > { %4128 = vmatprep.subr.bf16.mxu0 %v4127_v22  ;;  %v4163_v22 = vpack.c.bf16 %v2621_v21, %v2620_v20  ;;  %v3386_v20 = vld [vmem:[%s6594_s29 + $0x290] sm:$0xff]  ;;  %v3387_v21 = vld [vmem:[%s6594_s29 + $0x298] sm:$0xff] }
 0x74e   : > { %v4203_v24 = vpack.c.bf16 %v3387_v21, %v3386_v20 }
 0x750   : > { %4130 = vmatpush1.bf16.msra.mxu0 %v4129_v27  ;;  %v3353_v27 = vld [vmem:[%s6594_s29 + $0x188] sm:$0xff] }
 0x751   : > { %4132 = vmatprep.subr.bf16.mxu0 %v4131_v28  ;;  %v4167_v28 = vpack.c.bf16 %v3353_v27, %v3352_v26  ;;  %v3371_v26 = vld [vmem:[%s6594_s29 + $0x218] sm:$0xff] }
 0x754   : > { %4134 = vmatpush1.bf16.msra.mxu0 %v4133_v31 }
 0x757   : > { %2496 = vmatmul.mubr.f32.vlgmr.msra.gmra.mrb[10].mxu0 %v2427_v33  ;;  %v3355_v33 = vld [vmem:[%s6594_s29 + $0x198] sm:$0xff] }
 0x758   : > { %v4171_v38 = vpack.c.bf16 %v3355_v33, %v3354_v32  ;;  %v3372_v32 = vld [vmem:[%s6594_s29 + $0x220] sm:$0xff]  ;;  %v3373_v33 = vld [vmem:[%s6594_s29 + $0x228] sm:$0xff] }
 0x82a   : > { %v2497_v39 = vpop.f32.mrb[10].mxu0 }
 0x82b   : > { %v2499_v41 = vpop.f32.mrb[11].mxu0  ;;  %v4240_v44 = vadd.f32 %v2497_v39, %v2134_v36  ;;  %v4169_v36 = vpack.c.bf16 %v3337_v30, %v3336_v29  ;;  %v3338_v39 = vld [vmem:[%s6594_s29 + $0x110] sm:$0xff]  ;;  %v3389_v29 = vld [vmem:[%s6594_s29 + $0x2a8] sm:$0xff] }
 0x82c   : > { %v4241_v42 = vadd.f32 %v2499_v41, %v2138_v35  ;;  %v3356_v41 = vld [vmem:[%s6594_s29 + $0x1a0] sm:$0xff]  ;;  %v4173_v6 = vpack.c.bf16 %v3339_v40, %v3338_v39  ;;  %v3374_v39 = vld [vmem:[%s6594_s29 + $0x230] sm:$0xff]  ;;  %v3375_v40 = vld [vmem:[%s6594_s29 + $0x238] sm:$0xff] }
 0x82e   : > { %3333 = vmatprep.subr.msk.mxu1 %vm2509_vm15, %v4241_v42  ;;  %v4175_v42 = vpack.c.bf16 %v3357_v5, %v3356_v41  ;;  %v3393_v41 = vld [vmem:[%s6594_s29 + $0x2c8] sm:$0xff]  ;;  %v4213_v5 = vpack.c.bf16 %v3375_v40, %v3374_v39 }
 0x82f   : > { %3334 = vmatpush1.msk.msra.mxu1 %vm2509_vm15, %v4240_v44  ;;  %v3341_v44 = vld [vmem:[%s6594_s29 + $0x128] sm:$0xff] }
 0x830   : > { %3335 = vmatmul.mubr.msk.f32.vlgmr.msra.gmra.mrb[10].mxu1 %vm2505_vm0, %v2504_v45  ;;  %4136 = vmatprep.subr.bf16.mxu1 %v4135_v43  ;;  %v3340_v43 = vld [vmem:[%s6594_s29 + $0x120] sm:$0xff]  ;;  %v3358_v45 = vld [vmem:[%s6594_s29 + $0x1b0] sm:$0xff] }
 0x831   : > { %4138 = vmatpush3.bf16.msra.mxu1 %v4137_v46  ;;  %v3359_v46 = vld [vmem:[%s6594_s29 + $0x1b8] sm:$0xff] }
 0x832   : > { %4140 = vmatprep.subr.bf16.mxu1 %v4139_v47  ;;  %v4177_v47 = vpack.c.bf16 %v3341_v44, %v3340_v43  ;;  %v4179_v48 = vpack.c.bf16 %v3359_v46, %v3358_v45  ;;  %v3377_v43 = vld [vmem:[%s6594_s29 + $0x248] sm:$0xff]  ;;  %v3394_v44 = vld [vmem:[%s6594_s29 + $0x2d0] sm:$0xff]  ;;  %v3395_v45 = vld [vmem:[%s6594_s29 + $0x2d8] sm:$0xff] }
 0x835   : > { %4142 = vmatpush3.bf16.msra.mxu1 %v4141_v52  ;;  %v3361_v52 = vld [vmem:[%s6594_s29 + $0x1c8] sm:$0xff] }
 0x836   : > { %4144 = vmatprep.subr.bf16.mxu1 %v4143_v53  ;;  %v4181_v53 = vpack.c.bf16 %v3343_v50, %v3342_v49  ;;  %v4183_v54 = vpack.c.bf16 %v3361_v52, %v3360_v51  ;;  %v3379_v49 = vld [vmem:[%s6594_s29 + $0x258] sm:$0xff]  ;;  %v3396_v50 = vld [vmem:[%s6594_s29 + $0x2e0] sm:$0xff]  ;;  %v3397_v51 = vld [vmem:[%s6594_s29 + $0x2e8] sm:$0xff] }
 0x839   : > { %4146 = vmatpush3.bf16.msra.mxu1 %v4145_v58  ;;  %v3363_v58 = vld [vmem:[%s6594_s29 + $0x1d8] sm:$0xff] }
 0x83a   : > { %4148 = vmatprep.subr.bf16.mxu1 %v4147_v59  ;;  %v4185_v59 = vpack.c.bf16 %v3345_v56, %v3344_v55  ;;  %v4187_v60 = vpack.c.bf16 %v3363_v58, %v3362_v57  ;;  %v3381_v55 = vld [vmem:[%s6594_s29 + $0x268] sm:$0xff]  ;;  %v3398_v56 = vld [vmem:[%s6594_s29 + $0x2f0] sm:$0xff]  ;;  %v3399_v57 = vld [vmem:[%s6594_s29 + $0x2f8] sm:$0xff] }
 0x83d   : > { %4150 = vmatpush3.bf16.msra.mxu1 %v4149_v2  ;;  %v3365_v2 = vld [vmem:[%s6594_s29 + $0x1e8] sm:$0xff] }
 0x83e   : > { %4152 = vmatprep.subr.bf16.mxu1 %v4151_v3  ;;  %v4189_v3 = vpack.c.bf16 %v3347_v62, %v3346_v61  ;;  %v4191_v4 = vpack.c.bf16 %v3365_v2, %v3364_v63  ;;  %v3383_v61 = vld [vmem:[%s6594_s29 + $0x278] sm:$0xff] }
 0x841   : > { %4154 = vmatpush3.bf16.msra.mxu1 %v4153_v1  ;;  %v3367_v1 = vld [vmem:[%s6594_s29 + $0x1f8] sm:$0xff] }
 0x842   : > { %4156 = vmatprep.subr.bf16.mxu1 %v4155_v10  ;;  %v4193_v10 = vpack.c.bf16 %v3349_v7, %v3348_v0  ;;  %v4195_v11 = vpack.c.bf16 %v3367_v1, %v3366_v9  ;;  %v2589_v0 = vld [vmem:[#allocation20] sm:$0x1] }
 0x845   : > { %4158 = vmatpush3.bf16.msra.mxu1 %v4157_v15  ;;  %v3385_v15 = vld [vmem:[%s6594_s29 + $0x288] sm:$0xff] }
 0x846   : > { %4160 = vmatprep.subr.bf16.mxu1 %v4159_v16  ;;  %v4197_v16 = vpack.c.bf16 %v3351_v13, %v3350_v12  ;;  %v4199_v17 = vpack.c.bf16 %v3385_v15, %v3384_v14 }
 0x849   : > { %4162 = vmatpush3.bf16.msra.mxu1 %v4161_v19  ;;  %v3369_v19 = vld [vmem:[%s6594_s29 + $0x208] sm:$0xff] }
 0x84a   : > { %4164 = vmatprep.subr.bf16.mxu1 %v4163_v22  ;;  %v4201_v22 = vpack.c.bf16 %v3369_v19, %v3368_v18 }
 0x84d   : > { %4166 = vmatpush3.bf16.msra.mxu1 %v4165_v25  ;;  %v3370_v25 = vld [vmem:[%s6594_s29 + $0x210] sm:$0xff] }
 0x84e   : > { %4168 = vmatprep.subr.bf16.mxu1 %v4167_v28  ;;  %v3388_v28 = vld [vmem:[%s6594_s29 + $0x2a0] sm:$0xff]  ;;  %v4205_v30 = vpack.c.bf16 %v3371_v26, %v3370_v25 }
 0x903   : > { %v2582_v31 = vpop.f32.mrb[10].mxu1 }
 0x904   : > { %v2584_v34 = vpop.f32.mrb[11].mxu1  ;;  %v6302_v37 = vmax.f32 %v2582_v31, 0.0  ;;  %v4207_v31 = vpack.c.bf16 %v3389_v29, %v3388_v28 }
 0x905   : > { %v6300_v35 = vmax.f32 %v2584_v34, 0.0  ;;  %v3390_v34 = vld [vmem:[%s6594_s29 + $0x2b0] sm:$0xff] }
 0x906   : > { %v2728_v23 = vrot.slane %v6302_v37, 1  ;;  %v2836_v63 = vrot.slane %v6302_v37, 2 }
 0x907   : > { %2686 = vmatprep.mubr.f32.mxu1 %v6300_v35  ;;  %v2729_v8 = vrot.slane %v6300_v35, 1  ;;  %v2837_v27 = vrot.slane %v6300_v35, 2  ;;  %v3391_v35 = vld [vmem:[%s6594_s29 + $0x2b8] sm:$0xff] }
 0x908   : > { %2687 = vmatmul.mubr.f32.vlgmr.msra.gmra.mrb[12].mxu1 %v6302_v37 }
 0x909   : > { %4170 = vmatpush3.bf16.msra.mxu1 %v4169_v36  ;;  %2796 = vmatprep.mubr.f32.mxu1 %v2729_v8  ;;  %v4209_v36 = vpack.c.bf16 %v3373_v33, %v3372_v32  ;;  %v3392_v8 = vld [vmem:[%s6594_s29 + $0x2c0] sm:$0xff] }
 0x90a   : > { %4172 = vmatprep.subr.bf16.mxu1 %v4171_v38  ;;  %v4211_v38 = vpack.c.bf16 %v3391_v35, %v3390_v34 }
 0x90d   : > { %4174 = vmatpush3.bf16.msra.mxu1 %v4173_v6  ;;  %v4215_v6 = vpack.c.bf16 %v3393_v41, %v3392_v8 }
 0x90e   : > { %4176 = vmatprep.subr.bf16.mxu1 %v4175_v42  ;;  %v3376_v42 = vld [vmem:[%s6594_s29 + $0x240] sm:$0xff] }
 0x90f   : > { %v4217_v46 = vpack.c.bf16 %v3377_v43, %v3376_v42 }
 0x911   : > { %4178 = vmatpush3.bf16.msra.mxu1 %v4177_v47  ;;  %v4219_v47 = vpack.c.bf16 %v3395_v45, %v3394_v44 }
 0x912   : > { %4180 = vmatprep.subr.bf16.mxu1 %v4179_v48  ;;  %v3378_v48 = vld [vmem:[%s6594_s29 + $0x250] sm:$0xff] }
 0x913   : > { %v4221_v52 = vpack.c.bf16 %v3379_v49, %v3378_v48 }
 0x915   : > { %4182 = vmatpush3.bf16.msra.mxu1 %v4181_v53  ;;  %v4223_v53 = vpack.c.bf16 %v3397_v51, %v3396_v50 }
 0x916   : > { %4184 = vmatprep.subr.bf16.mxu1 %v4183_v54  ;;  %v3380_v54 = vld [vmem:[%s6594_s29 + $0x260] sm:$0xff] }
 0x917   : > { %v4225_v58 = vpack.c.bf16 %v3381_v55, %v3380_v54 }
 0x919   : > { %4186 = vmatpush3.bf16.msra.mxu1 %v4185_v59  ;;  %v4227_v59 = vpack.c.bf16 %v3399_v57, %v3398_v56 }
 0x91a   : > { %4188 = vmatprep.subr.bf16.mxu1 %v4187_v60  ;;  %v3382_v60 = vld [vmem:[%s6594_s29 + $0x270] sm:$0xff] }
 0x91b   : > { %v4229_v62 = vpack.c.bf16 %v3383_v61, %v3382_v60 }
 0x91d   : > { %4190 = vmatpush3.bf16.msra.mxu1 %v4189_v3 }
 0x91e   : > { %4192 = vmatprep.subr.bf16.mxu1 %v4191_v4 }
 0x921   : > { %4194 = vmatpush3.bf16.msra.mxu1 %v4193_v10 }
 0x922   : > { %4196 = vmatprep.subr.bf16.mxu1 %v4195_v11 }
 0x925   : > { %4198 = vmatpush3.bf16.msra.mxu1 %v4197_v16 }
 0x926   : > { %4200 = vmatprep.subr.bf16.mxu1 %v4199_v17 }
 0x928   : > { %2797 = vmatmul.mubr.f32.vlgmr.msra.gmra.mrb[14].mxu1 %v2728_v23 }
 0x929   : > { %4202 = vmatpush3.bf16.msra.mxu1 %v4201_v22  ;;  %2904 = vmatprep.mubr.f32.mxu1 %v2837_v27 }
 0x92a   : > { %4204 = vmatprep.subr.bf16.mxu1 %v4203_v24 }
 0x92d   : > { %4206 = vmatpush3.bf16.msra.mxu1 %v4205_v30 }
 0x92e   : > { %4208 = vmatprep.subr.bf16.mxu1 %v4207_v31 }
 0x931   : > { %4210 = vmatpush3.bf16.msra.mxu1 %v4209_v36 }
 0x932   : > { %4212 = vmatprep.subr.bf16.mxu1 %v4211_v38 }
 0x935   : > { %4214 = vmatpush3.bf16.msra.mxu1 %v4213_v5 }
 0x936   : > { %4216 = vmatprep.subr.bf16.mxu1 %v4215_v6 }
 0x939   : > { %4218 = vmatpush3.bf16.msra.mxu1 %v4217_v46 }
 0x93a   : > { %4220 = vmatprep.subr.bf16.mxu1 %v4219_v47 }
 0x93d   : > { %4222 = vmatpush3.bf16.msra.mxu1 %v4221_v52 }
 0x93e   : > { %4224 = vmatprep.subr.bf16.mxu1 %v4223_v53 }
 0x941   : > { %4226 = vmatpush3.bf16.msra.mxu1 %v4225_v58 }
 0x942   : > { %4228 = vmatprep.subr.bf16.mxu1 %v4227_v59 }
 0x945   : > { %4230 = vmatpush3.bf16.msra.mxu1 %v4229_v62 }
 0x948   : > { %2905 = vmatmul.mubr.f32.vlgmr.msra.gmra.mrb[16].mxu1 %v2836_v63 }
 0x9db   : > { %v3513_v2 = vpop.f32.mrb[12].mxu1 }
 0x9dc   : > { %v3514_v3 = vpop.f32.mrb[13].mxu1 }
 0x9dd   : > { %v3515_v4 = vadd.f32 %v3514_v3, %v3513_v2 }
 0x9df   : > { %v2692_v1 = vadd.f32 %v3515_v4, %v2589_v0 }
 0x9fb   : > { %v3548_v7 = vpop.f32.mrb[14].mxu1 }
 0x9fc   : > { %v3549_v9 = vpop.f32.mrb[15].mxu1 }
 0x9fd   : > { %v3550_v10 = vadd.f32 %v3549_v9, %v3548_v7 }
 0x9ff   : > { %v2802_v11 = vadd.f32 %v3550_v10, %v2692_v1 }
 0xa1b   : > { %v3583_v12 = vpop.f32.mrb[16].mxu1 }
 0xa1c   : > { %v3584_v13 = vpop.f32.mrb[17].mxu1 }
 0xa1d   : > { %v3585_v14 = vadd.f32 %v3584_v13, %v3583_v12 }
 0xa1f   : > { %v2910_v37 = vadd.f32 %v3585_v14, %v2802_v11 }
 0xa21   : > { %2912 = vst.msk [vmem:[%s630_s27] sm:$0x1] %vm2911_vm1, %v2910_v37 }
 0xa22   : > { %4681 = shalt.err (!%p4678_p4)
}
 0xa23   : > { %s4682_s22 = scalar_lea.hbm %s6489_s26, 16  ;;  %s4686_s24 = scalar_lea.hbm %s6598_s18, 32 }
 0xa24   : > { %p4683_p12 = scmp.ne.s32.totalorder %s6489_s26, %s4682_s22  ;;  %p4687_p11 = scmp.lt.u32.totalorder %s6489_s26, %s6598_s18 }
 0xa25   : > { %p4688_p13 = scmp.lt.u32.totalorder %s4686_s24, %s4682_s22  ;;  %p4690_p6 = scmp.lt.u32.totalorder %s4682_s22, %s6489_s26 }
 0xa26   : > { %p4684_p7 = pnand %p4683_p12, %p6599_p9 }
 0xa27   : > { %p4689_p1 = por %p4688_p13, %p4687_p11 }
 0xa28   : > { %p4685_p8 = pneg %p4684_p7 }
 0xa29   : > { %p4691_p5 = por %p4690_p6, %p4689_p1 }
 0xa2b   : > { %p4692_p10 = pnand %p4691_p5, %p4685_p8 }
 0xa2d   : > { %4695 = shalt.err (!%p4692_p10)
}
 0xa2e   : > { %4315 = dma.vmem_to_hbm [thread:$0]  (%p6599_p9), %s6491_s17, 16, %s6489_s26, %s2914_s21  }
 0xa2f PF: > { %s6600_s13 = sld [smem:[#allocation31_spill]]  ;;  %s6601_s16 = sld [smem:[#allocation28_spill]] }
 0xa30   : > { %s6602_s14 = sld [smem:[#allocation35_spill]] }
 0xa35   : > { %p4367_p0 = scmp.ge.s32.totalorder %s6600_s13, 2  ;;  %s2938_s25 = sand.u32 1, %s6601_s16  }
 0xa36   : > { %p6603_p2 = scmp.ne.s32.totalorder %s6602_s14, 0  ;;  %s2939_s30 = scalar_lea.sflag [#allocation8], %s2938_s25 }
 0xa38   : > { %p4346_p3 = pnand %p4367_p0, %p6603_p2 }
 0xa3a   : > { %4733 = dma.done.wait (!%p4346_p3), %s2939_s30, 16  }
 0xa3b   : > { %4735 = vsyncadd (!%p4346_p3), %s2939_s30, 4294967280  ;;  %s6604_s24 = sld [smem:[#allocation32_spill]]  ;;  %s6605_s21 = sld [smem:[#allocation29_spill]] }
 0xa3c   : > { %s6606_s22 = sld [smem:[#allocation30_spill]]  ;;  %s6607_s23 = sld [smem:[#allocation33_spill]] }
 0xa41   : > { %p31_p4 = scmp.ge.s32.totalorder %s6604_s24, 4  }
 0xa43   :  { %33 = sbr.rel (!%p31_p4) target bundleno = 13 (0xd), region = 168 }
 0xa4a   :  { %2943 = vsyncpa [#allocation7], 1 }
 0xa4b   :  { %2945 = vsyncpa [#allocation7 + $0x1], 1 }
 0xa4c   :  { %2946 = vsyncpa [#allocation10], 1 }
 0xa4d   :  { %2947 = vsyncpa [#allocation13], 1 }
 0xa4e   :  { %2948 = vsyncpa [#allocation16], 1 }
 0xa4f   :  { %2949 = vsyncpa [#allocation19], 1 }
 0xa50   :  { %2950 = vsyncpa [#allocation8], 1 }
 0xa51   :  { %2952 = vsyncpa [#allocation8 + $0x1], 1 }

</bundles_post_ra>
